<compile_context>
chip_gen: v7x
topology: tpu7x:2x2x1
jax: 0.10.0
libtpu: 0.0.40
codegen_flags: <defaults>
</compile_context>

<pallas_src>
import jax
import jax.numpy as jnp
from jax.experimental import pallas as pl
from jax.experimental.pallas import tpu as pltpu


def _round_up(a: int, m: int) -> int:
    return ((a + m - 1) // m) * m


def _linear_kernel(x_ref, w_ref, b_ref, o_ref, acc_ref):
    # x_ref: (M, tk)   bf16 activation K-slab
    # w_ref: (tk, tn)  bf16 contiguous weight slab (N-tile j, K-tile k)
    # b_ref: (1, tn)   f32 bias tile
    # o_ref: (M, tn)   output tile (resident across the K axis)
    # acc_ref: (M, tn) f32 accumulator scratch
    k = pl.program_id(1)

    @pl.when(k == 0)
    def _():
        acc_ref[...] = jnp.zeros_like(acc_ref)

    acc_ref[...] += jnp.dot(
        x_ref[...], w_ref[...], preferred_element_type=jnp.float32
    )

    @pl.when(k == pl.num_programs(1) - 1)
    def _():
        o_ref[...] = (acc_ref[...] + b_ref[...]).astype(o_ref.dtype)


def prepare_transmission_matrix_params(
    weight, bias, *, tn=256, target_k_steps=4, param_dtype=jnp.bfloat16
):
    """One-time (model-load) weight/bias prep.

    weight: (N, K) in PyTorch nn.Linear layout (out_features, in_features).
    bias:   (N,)
    Returns (w_tiled (n_n, K_pad, tn) bf16, b_pad (1, N_pad) f32, meta dict).
    """
    N, K = weight.shape
    assert bias.shape == (N,), bias.shape

    N_pad = _round_up(N, 128)
    tn = min(tn, N_pad)
    assert N_pad % tn == 0
    n_n = N_pad // tn

    # K tile: multiple of 128 (lane constraint on the activation block), sized
    # for ~target_k_steps grid steps so per-step DMA (>~1 MB) hides the
    # ~0.35us/step overhead on all of v5e/v6e/v7x.
    tk = _round_up(pl.cdiv(K, target_k_steps), 128)
    n_k = pl.cdiv(K, tk)
    K_pad = n_k * tk

    w = weight.astype(param_dtype).T                       # (K, N) bf16
    w = jnp.pad(w, ((0, K_pad - K), (0, N_pad - N)))       # zero-padded rows/cols
    # Pre-tile along N so each grid step's (tk, tn) weight DMA is contiguous.
    w_tiled = w.reshape(K_pad, n_n, tn).transpose(1, 0, 2)  # (n_n, K_pad, tn)
    w_tiled = jax.block_until_ready(w_tiled)

    b_pad = jnp.pad(bias.astype(jnp.float32), (0, N_pad - N)).reshape(1, N_pad)
    b_pad = jax.block_until_ready(b_pad)

    meta = dict(K=K, N=N, K_pad=K_pad, N_pad=N_pad, tk=tk, tn=tn,
                n_n=n_n, n_k=n_k)
    return w_tiled, b_pad, meta


def transmission_matrix_forward(x, w_tiled, b_pad, meta, Wout, *, out_dtype=None):
    """x: (B, C, H, W) with H*W == meta['K']; params from prepare_*()."""
    B, C, H, W = x.shape
    M = B * C
    K = H * W
    N = Wout * Wout
    assert K == meta["K"], (K, meta["K"])
    assert N == meta["N"], (N, meta["N"])

    out_dtype = jnp.dtype(out_dtype or x.dtype)
    assert jnp.issubdtype(out_dtype, jnp.floating), out_dtype

    K_pad, N_pad = meta["K_pad"], meta["N_pad"]
    tk, tn = meta["tk"], meta["tn"]
    n_n, n_k = meta["n_n"], meta["n_k"]

    # Per-call activation prep (cheap: ~M*K*2 bytes vs the 7.4 MB weight).
    x2 = x.reshape(M, K).astype(jnp.bfloat16)
    if K_pad != K:
        x2 = jnp.pad(x2, ((0, 0), (0, K_pad - K)))

    cost = pl.CostEstimate(
        flops=2 * M * K_pad * N_pad,
        transcendentals=0,
        bytes_accessed=(K_pad * N_pad * 2) + (M * K_pad * 2)
        + (M * N_pad * out_dtype.itemsize) + (N_pad * 4),
    )

    out = pl.pallas_call(
        _linear_kernel,
        out_shape=jax.ShapeDtypeStruct((M, N_pad), out_dtype),
        grid=(n_n, n_k),
        in_specs=[
            # activation K-slab (double-buffered, tiny)
            pl.BlockSpec((M, tk), lambda j, k: (0, k)),
            # contiguous weight slab: leading n_n axis squeezed out
            pl.BlockSpec((None, tk, tn), lambda j, k: (j, k, 0)),
            # bias tile (tiny)
            pl.BlockSpec((1, tn), lambda j, k: (0, j)),
        ],
        out_specs=pl.BlockSpec((M, tn), lambda j, k: (0, j)),
        scratch_shapes=[pltpu.VMEM((M, tn), jnp.float32)],
        compiler_params=pltpu.CompilerParams(
            dimension_semantics=("parallel", "arbitrary"),
        ),
        cost_estimate=cost,
    )(x2, w_tiled, b_pad)

    if N_pad != N:
        out = out[:, :N]
    return out.reshape(B, C, Wout, Wout)


if __name__ == "__main__":
    key = jax.random.PRNGKey(0)
    k_x, k_w, k_b = jax.random.split(key, 3)

    # H*W must equal 14400 (hard-coded nn.Linear(14400, ...)): 120x120 spatial.
    B, C, H, W = 2, 4, 120, 120
    Wout = 16                      # output (B, C, 16, 16)
    K = H * W                      # 14400
    N = Wout * Wout                # 256

    x = jax.random.normal(k_x, (B, C, H, W), dtype=jnp.float32)

    # Deterministic synthetic Linear params in PyTorch layout (N, K), default
    # init style uniform(-1/sqrt(fan_in), 1/sqrt(fan_in)).
    bound = 1.0 / (K ** 0.5)
    weight = jax.random.uniform(k_w, (N, K), minval=-bound, maxval=bound,
                                dtype=jnp.float32)
    bias = jax.random.uniform(k_b, (N,), minval=-bound, maxval=bound,
                              dtype=jnp.float32)

    # Model-load-time prep (cast/pad/tile the weight ONCE, not per call).
    w_tiled, b_pad, meta = prepare_transmission_matrix_params(weight, bias)

    out = transmission_matrix_forward(x, w_tiled, b_pad, meta, Wout)
    out = jax.block_until_ready(out)
    assert out.shape == (B, C, Wout, Wout), out.shape

    # Reference with the same bf16 operand rounding the kernel uses (bf16
    # inputs, f32 accumulate, f32 bias add).
    x_bf = x.reshape(B * C, K).astype(jnp.bfloat16).astype(jnp.float32)
    w_bf = weight.T.astype(jnp.bfloat16).astype(jnp.float32)
    ref = (jnp.dot(x_bf, w_bf, precision=jax.lax.Precision.HIGHEST)
           + bias).reshape(B, C, Wout, Wout)
    assert jnp.allclose(out, ref, atol=1e-3, rtol=1e-3)

    # Looser sanity check against the full-f32 PyTorch-equivalent forward.
    ref_f32 = (x.reshape(B * C, K) @ weight.T + bias).reshape(B, C, Wout, Wout)
    assert jnp.allclose(out, ref_f32, atol=5e-2, rtol=5e-2)

    print("KERNEL_OK")
</pallas_src>

<mosaic_0001>
module attributes {stable_mosaic.version = 11 : i64} {
  func.func @_linear_kernel(%arg0: i32, %arg1: i32, %arg2: memref<8x3712xbf16, #tpu.memory_space<vmem>>, %arg3: memref<1x3712x256xbf16, #tpu.memory_space<vmem>>, %arg4: memref<1x256xf32, #tpu.memory_space<vmem>>, %arg5: memref<8x256xf32, #tpu.memory_space<vmem>>, %arg6: memref<8x256xf32, #tpu.memory_space<vmem>>) attributes {dimension_semantics = [#tpu.dimension_semantics<parallel>, #tpu.dimension_semantics<arbitrary>], iteration_bounds = array<i64: 1, 4>, scalar_prefetch = 0 : i64, scratch_operands = 1 : i64, tpu.core_type = #tpu.core_type<tc>, window_params = [{transform_indices = @transform_0, window_bounds = array<i64: 8, 3712>}, {transform_indices = @transform_1, window_bounds = array<i64: 1, 3712, 256>}, {transform_indices = @transform_2, window_bounds = array<i64: 1, 256>}, {transform_indices = @transform_3, window_bounds = array<i64: 8, 256>}]} {
    %c0_i32 = arith.constant 0 : i32
    %0 = arith.cmpi eq, %arg1, %c0_i32 : i32
    %1 = arith.extui %0 : i1 to i32
    %c0_i32_0 = arith.constant 0 : i32
    %2 = arith.cmpi ne, %1, %c0_i32_0 : i32
    scf.if %2 {
      %cst_10 = arith.constant 0.000000e+00 : f32
      %13 = vector.broadcast %cst_10 : f32 to vector<8x256xf32>
      %c0_11 = arith.constant 0 : index
      %c0_12 = arith.constant 0 : index
      %14 = vector.load %arg6[%c0_11, %c0_12] : memref<8x256xf32, #tpu.memory_space<vmem>>, vector<8x256xf32>
      tpu.vector_store %arg6[%c0_11, %c0_12], %13 {strides = array<i32>} : memref<8x256xf32, #tpu.memory_space<vmem>>, vector<8x256xf32>,
    } else {
    }
    %c0 = arith.constant 0 : index
    %c0_1 = arith.constant 0 : index
    %3 = vector.load %arg6[%c0, %c0_1] : memref<8x256xf32, #tpu.memory_space<vmem>>, vector<8x256xf32>
    %c0_2 = arith.constant 0 : index
    %c0_3 = arith.constant 0 : index
    %4 = vector.load %arg2[%c0_2, %c0_3] : memref<8x3712xbf16, #tpu.memory_space<vmem>>, vector<8x3712xbf16>
    %c0_4 = arith.constant 0 : index
    %c0_5 = arith.constant 0 : index
    %c0_6 = arith.constant 0 : index
    %5 = vector.load %arg3[%c0_4, %c0_5, %c0_6] : memref<1x3712x256xbf16, #tpu.memory_space<vmem>>, vector<1x3712x256xbf16>
    %6 = vector.shape_cast %5 : vector<1x3712x256xbf16> to vector<3712x256xbf16>
    %cst = arith.constant dense<0.000000e+00> : vector<8x256xf32>
    %7 = tpu.matmul %4, %6, %cst {dimension_numbers = #tpu.dot_dimension_numbers<[1], [0], [0], [1], [0, 0, 1, 1], [], []>} : vector<8x3712xbf16>, vector<3712x256xbf16>, vector<8x256xf32> -> vector<8x256xf32>
    %8 = arith.addf %3, %7 : vector<8x256xf32>
    %c0_7 = arith.constant 0 : index
    %c0_8 = arith.constant 0 : index
    %9 = vector.load %arg6[%c0_7, %c0_8] : memref<8x256xf32, #tpu.memory_space<vmem>>, vector<8x256xf32>
    tpu.vector_store %arg6[%c0_7, %c0_8], %8 {strides = array<i32>} : memref<8x256xf32, #tpu.memory_space<vmem>>, vector<8x256xf32>,
    %c3_i32 = arith.constant 3 : i32
    %10 = arith.cmpi eq, %arg1, %c3_i32 : i32
    %11 = arith.extui %10 : i1 to i32
    %c0_i32_9 = arith.constant 0 : i32
    %12 = arith.cmpi ne, %11, %c0_i32_9 : i32
    scf.if %12 {
      %c0_10 = arith.constant 0 : index
      %c0_11 = arith.constant 0 : index
      %13 = vector.load %arg6[%c0_10, %c0_11] : memref<8x256xf32, #tpu.memory_space<vmem>>, vector<8x256xf32>
      %c0_12 = arith.constant 0 : index
      %c0_13 = arith.constant 0 : index
      %14 = vector.load %arg4[%c0_12, %c0_13] : memref<1x256xf32, #tpu.memory_space<vmem>>, vector<1x256xf32>
      %15 = vector.broadcast %14 : vector<1x256xf32> to vector<8x256xf32>
      %16 = arith.addf %13, %15 : vector<8x256xf32>
      %c0_14 = arith.constant 0 : index
      %c0_15 = arith.constant 0 : index
      %17 = vector.load %arg5[%c0_14, %c0_15] : memref<8x256xf32, #tpu.memory_space<vmem>>, vector<8x256xf32>
      tpu.vector_store %arg5[%c0_14, %c0_15], %16 {strides = array<i32>} : memref<8x256xf32, #tpu.memory_space<vmem>>, vector<8x256xf32>,
    } else {
    }
    return
  }
  func.func @transform_0(%arg0: i32, %arg1: i32) -> (i32, i32) {
    %c0_i32 = arith.constant 0 : i32
    %c0_i32_0 = arith.constant 0 : i32
    return %c0_i32, %arg1 : i32, i32
  }
  func.func @transform_1(%arg0: i32, %arg1: i32) -> (i32, i32, i32) {
    %c0_i32 = arith.constant 0 : i32
    %c0_i32_0 = arith.constant 0 : i32
    return %arg0, %arg1, %c0_i32 : i32, i32, i32
  }
  func.func @transform_2(%arg0: i32, %arg1: i32) -> (i32, i32) {
    %c0_i32 = arith.constant 0 : i32
    %c0_i32_0 = arith.constant 0 : i32
    return %c0_i32, %arg0 : i32, i32
  }
  func.func @transform_3(%arg0: i32, %arg1: i32) -> (i32, i32) {
    %c0_i32 = arith.constant 0 : i32
    %c0_i32_0 = arith.constant 0 : i32
    return %c0_i32, %arg0 : i32, i32
  }
}

</mosaic_0001>

<bundles_post_ra>
// kernel: tpu_custom_call.1
= control target key start
LH: loop header
LB: loop body
LE: loop exit
PB: predicated region body
PF: predicated region fallthrough
CT: control target
= control target key end

     0   :  { %8 = vsyncpa [#allocation4], 0  ;;  %s6264_s0 = inlined_call_operand.hbm [shape: bf16[8,14848], index: 0, kind: input, shape index: {}]   ;;  %s6265_s1 = inlined_call_operand.hbm [shape: bf16[1,14848,256], index: 1, kind: input, shape index: {}]   ;;  %s6266_s2 = inlined_call_operand.hbm [shape: f32[1,256], index: 2, kind: input, shape index: {}]   ;;  %s6267_s3 = inlined_call_operand.hbm [shape: f32[8,256], index: 3, kind: output, shape index: {}]  }
   0x1   :  { %10 = vsyncpa [#allocation4 + $0x1], 0 }
   0x2   :  { %11 = vsyncpa [#allocation7], 0 }
   0x3   :  { %13 = vsyncpa [#allocation7 + $0x1], 0 }
   0x4   :  { %14 = vsyncpa [#allocation5], 0  ;;  %s5449_s12 = smov 0   ;;  %s5451_s13 = smov 0  }
   0x5   :  { %s5453_s14 = smov 0   ;;  %s5455_s15 = smov 0  }
   0x6   :  { %s5457_s16 = smov 0   ;;  %s5459_s17 = smov 0  }
   0x7 LB: > { %s5478_s18 = sadd.s32 4294967295, %s5419_s17   ;;  %s39_s19 = sadd.s32 1, %s5407_s14  ;;  %s5419_s17 = sphi %s5459_s17, %s20_s17   ;;  %s5415_s16 = sphi %s5457_s16, %s6288_s16   ;;  %s5411_s15 = sphi %s5455_s15, %s6287_s15   ;;  %s5407_s14 = sphi %s5453_s14, %s6286_s14   ;;  %s5403_s13 = sphi %s5451_s13, %s6285_s13   ;;  %s5399_s12 = sphi %s5449_s12, %s6284_s12  }
   0x8   : > { %p46_p0 = scmp.ne.s32.totalorder %s5407_s14, %s5403_s13  ;;  %p52_p1 = scmp.ne.s32.totalorder %s5403_s13, %s5399_s12 }
   0x9   : > { %p6268_p2 = scmp.eq.s32.totalorder %s5478_s18, 0  ;;  %p3921_p3 = scmp.ge.s32.totalorder %s5419_s17, 1 }
   0xa   : > { %p143_p4 = scmp.lt.s32.totalorder %s5419_s17, 5  ;;  %s5421_s22 = smov [#allocation8]  }
   0xb   : > { %p5489_p5 = por %p6268_p2, %p52_p1  ;;  %s159_s23 = sshll.u32 %s5421_s22, 4  ;;  %s160_s23 = int_to_ptr.vmem [resolvable:$true] %s159_s23 }
   0xc   : > { %p5493_p6 = pnand %p3921_p3, %p143_p4  ;;  %p47_p8 = scmp.eq.s32.totalorder %s5419_s17, 0 }
   0xd   : > { %s6271_s20 = scalar_select %p5489_p5, 1, 0 }
   0xe   : > { %s6272_s21 = scalar_select %p5493_p6, 1, 0 }
   0xf   : > { %p4448_p7 = pneg %p5493_p6  ;;  %s29_s25 = sadd.s32 1, %s5415_s16 }
  0x10   : > { %p5507_p10 = scmp.ge.s32.totalorder %s29_s25, 4  ;;  %p5514_p11 = por %p47_p8, %p46_p0 }
  0x11   : > { %p5502_p9 = pnand %p4448_p7, %p6268_p2  ;;  %s5243_s30 = scalar_lea.hbm %s6266_s2, 32 }
  0x12   : > { %s6274_s26 = scalar_select %p5507_p10, 1, 0 }
  0x13   : > { %s6275_s27 = scalar_select %p5514_p11, 1, 0 }
  0x14   : > { %p5244_p13 = scmp.ne.s32.totalorder %s6266_s2, %s5243_s30  ;;  %p5245_p1 = pneg %p5502_p9 }
  0x15   : > { %p5250_p0 = scmp.lt.u32.totalorder %s5243_s30, %s6266_s2 }
  0x16   : > { %p5246_p3 = pnand %p5245_p1, %p5244_p13 }
  0x18   : > { %p5247_p4 = pneg %p5246_p3 }
  0x1a   : > { %p5252_p7 = pnand %p5250_p0, %p5247_p4 }
  0x1c   : > { %5255 = shalt.err (!%p5252_p7)
}
  0x1d   : > { %s5256_s8 = scalar_lea.vmem %s160_s23, 32  ;;  %p5264_p5 = scmp.lt.s32.totalorder %s160_s23, %s160_s23 }
  0x1e   : > { %p5257_p8 = scmp.ne.s32.totalorder %s160_s23, %s5256_s8  ;;  %p5265_p6 = scmp.lt.s32.totalorder %s5256_s8, %s5256_s8 }
  0x20   : > { %p5259_p2 = pnand %p5257_p8, %p5245_p1  ;;  %p5266_p11 = por %p5265_p6, %p5264_p5 }
  0x22   : > { %p5260_p12 = pneg %p5259_p2 }
  0x24   : > { %p5267_p10 = pnand %p5266_p11, %p5260_p12 }
  0x26   : > { %5270 = shalt.err (!%p5267_p10)
}
  0x27   : > { %4451 = dma.hbm_to_vmem [thread:$0]  (!%p5502_p9), %s6266_s2, 32, %s160_s23, [#allocation7]  }
  0x28   : > { %p6276_p2 = scmp.ne.s32.totalorder %s6274_s26, 0  ;;  %s5540_s11 = sand.u32 1, %s5407_s14  }
  0x29   : > { %s4428_s12 = smul.u32 1856, %s5415_s16  ;;  %p6277_p6 = scmp.ne.s32.totalorder %s6275_s27, 0 }
  0x2a   : > { %s6290_s25 = smov (%p6276_p2, %s29_s25), 0  ;;  %s4432_s24 = smul.u32 116, %s5540_s11 }
  0x2b   : > { %s36_s22 = ssub.s32 %s5415_s16, %s6290_s25  ;;  %s5549_s30 = scalar_lea.hbm %s6264_s0, %s4428_s12 }
  0x2c   : > { %p37_p5 = scmp.eq.s32.totalorder %s36_s22, 0  ;;  %p6278_p9 = scmp.lt.s32.totalorder %s5419_s17, 4 }
  0x2d   : > { %s174_s4 = scalar_lea.vmem [#allocation3], %s4432_s24  ;;  %s4433_s6 = smul.u32 3712, %s5540_s11 }
  0x2e   : > { %p5555_p10 = pnand %p6278_p9, %p6277_p6  ;;  %s182_s5 = sshll.u32 %s174_s4, 4  ;;  %s5565_s5 = int_to_ptr.vmem [resolvable:$true] %s182_s5 }
  0x2f   : > { %s5562_s26 = scalar_select %p37_p5, %s5407_s14, %s39_s19  }
  0x30   : > { %s4431_s27 = smul.u32 59392, %s5415_s16  ;;  %s171_s7 = scalar_lea.sflag [#allocation4], %s5540_s11 }
  0x31   : > { %s5271_s8 = scalar_lea.hbm %s5549_s30, 1856  ;;  %p5273_p12 = pneg %p5555_p10 }
  0x32   : > { %p5272_p11 = scmp.ne.s32.totalorder %s5549_s30, %s5271_s8  ;;  %s5276_s19 = scalar_lea.hbm %s6264_s0, 7424 }
  0x33   : > { %p5277_p3 = scmp.lt.u32.totalorder %s5549_s30, %s6264_s0  ;;  %p5278_p4 = scmp.lt.u32.totalorder %s5276_s19, %s5271_s8 }
  0x34   : > { %p5274_p13 = pnand %p5273_p12, %p5272_p11  ;;  %p5280_p7 = scmp.lt.u32.totalorder %s5271_s8, %s5549_s30 }
  0x35   : > { %p5279_p0 = por %p5278_p4, %p5277_p3 }
  0x36   : > { %p5275_p1 = pneg %p5274_p13 }
  0x37   : > { %p5281_p8 = por %p5280_p7, %p5279_p0 }
  0x39   : > { %p5282_p2 = pnand %p5281_p8, %p5275_p1 }
  0x3b   : > { %5285 = shalt.err (!%p5282_p2)
}
  0x3c   : > { %s5286_s24 = scalar_lea.vmem %s5565_s5, 1856  ;;  %s5422_s28 = smov [#allocation3]  }
  0x3d   : > { %p5287_p5 = scmp.ne.s32.totalorder %s5565_s5, %s5286_s24  ;;  %s5291_s29 = sshll.u32 %s5422_s28, 4  ;;  %s5292_s29 = int_to_ptr.vmem [resolvable:$false] %s5291_s29 }
  0x3e   : > { %s5293_s4 = scalar_lea.vmem %s5292_s29, 3712  ;;  %p5294_p11 = scmp.lt.s32.totalorder %s5565_s5, %s5292_s29 }
  0x3f   : > { %p5289_p6 = pnand %p5287_p5, %p5273_p12  ;;  %p5295_p13 = scmp.lt.s32.totalorder %s5293_s4, %s5286_s24 }
  0x41   : > { %p5290_p9 = pneg %p5289_p6  ;;  %p5296_p3 = por %p5295_p13, %p5294_p11 }
  0x43   : > { %p5297_p4 = pnand %p5296_p3, %p5290_p9 }
  0x45   : > { %5300 = shalt.err (!%p5297_p4)
}
  0x46   : > { %4455 = dma.hbm_to_vmem [thread:$0]  (!%p5555_p10), %s5549_s30, 1856, %s5565_s5, %s171_s7  }
  0x47   : > { %s189_s8 = sand.u32 1, %s5419_s17   ;;  %s193_s9 = scalar_lea.vmem [#allocation6], %s4433_s6 }
  0x48   : > { %s203_s10 = sshll.u32 %s193_s9, 4  ;;  %s5604_s22 = scalar_lea.hbm %s6265_s1, %s4431_s27  ;;  %s5597_s10 = int_to_ptr.vmem [resolvable:$true] %s203_s10 }
  0x49   : > { %s5606_s24 = scalar_lea.sflag [#allocation7], %s189_s8  ;;  %s5301_s28 = scalar_lea.hbm %s5604_s22, 59392 }
  0x4a   : > { %p5302_p1 = scmp.ne.s32.totalorder %s5604_s22, %s5301_s28  ;;  %s5306_s5 = scalar_lea.hbm %s6265_s1, 237568 }
  0x4b   : > { %p5307_p8 = scmp.lt.u32.totalorder %s5604_s22, %s6265_s1  ;;  %p5308_p2 = scmp.lt.u32.totalorder %s5306_s5, %s5301_s28 }
  0x4c   : > { %p5304_p0 = pnand %p5302_p1, %p5273_p12  ;;  %p5310_p6 = scmp.lt.u32.totalorder %s5301_s28, %s5604_s22 }
  0x4d   : > { %p5309_p5 = por %p5308_p2, %p5307_p8 }
  0x4e   : > { %p5305_p7 = pneg %p5304_p0 }
  0x4f   : > { %p5311_p9 = por %p5310_p6, %p5309_p5 }
  0x51   : > { %p5312_p11 = pnand %p5311_p9, %p5305_p7 }
  0x53   : > { %5315 = shalt.err (!%p5312_p11)
}
  0x54   : > { %s5316_s27 = scalar_lea.vmem %s5597_s10, 59392  ;;  %s5423_s29 = smov [#allocation6]  }
  0x55   : > { %p5317_p13 = scmp.ne.s32.totalorder %s5597_s10, %s5316_s27  ;;  %s5321_s4 = sshll.u32 %s5423_s29, 4  ;;  %s5322_s4 = int_to_ptr.vmem [resolvable:$false] %s5321_s4 }
  0x56   : > { %s5323_s8 = scalar_lea.vmem %s5322_s4, 118784  ;;  %p5324_p1 = scmp.lt.s32.totalorder %s5597_s10, %s5322_s4 }
  0x57   : > { %p5319_p3 = pnand %p5317_p13, %p5273_p12  ;;  %p5325_p0 = scmp.lt.s32.totalorder %s5323_s8, %s5316_s27 }
  0x59   : > { %p5320_p4 = pneg %p5319_p3  ;;  %p5326_p8 = por %p5325_p0, %p5324_p1 }
  0x5b   : > { %p5327_p2 = pnand %p5326_p8, %p5320_p4 }
  0x5d   : > { %5330 = shalt.err (!%p5327_p2)
}
  0x5e   : > { %s5424_s9 = smov 128   ;;  %s5425_s19 = smov 8  }
  0x5f   : > { %4458 = dma.hbm_to_vmem [thread:$0]  (!%p5555_p10), %s5604_s22, 59392, %s5597_s10, %s5606_s24, %s5424_s9, %s5424_s9, %s5425_s19  }
  0x60   : > { %p6280_p12 = scmp.ne.s32.totalorder %s6272_s21, 0 }
  0x61   : > { %s217_s12 = sand.u32 (!%p6280_p12), 1, %s5403_s13   ;;  %p6281_p7 = scmp.ne.s32.totalorder (!%p6280_p12), %s6271_s20, 0 }
  0x62   : > { %215 = sbr.rel (%p6280_p12) target bundleno = 856 (0x358), region = 32  ;;  %s218_s11 = scalar_lea.sflag (!%p6280_p12), [#allocation4], %s217_s12 }
  0x63   : > { %s4434_s28 = smul.u32 (!%p6280_p12), 116, %s217_s12 }
  0x65   : > { %s5635_s30 = scalar_lea.vmem (!%p6280_p12), [#allocation3], %s4434_s28 }
  0x69   : > { %5382 = dma.done.wait (%p6281_p7), %s218_s11, 1856  }
  0x6a   : > { %5384 = vsyncadd (%p6281_p7), %s218_s11, 4294965440  ;;  %s226_s5 = sand.u32 1, %s5478_s18   ;;  %s4435_s23 = smul.u32 3712, %s217_s12 }
  0x6b   : > { %s227_s10 = scalar_lea.sflag [#allocation7], %s226_s5 }
  0x6c   : > { %s5642_s22 = scalar_lea.vmem [#allocation6], %s4435_s23 }
  0x6d   : > { %5386 = dma.done.wait (%p6281_p7), %s227_s10, 59392  }
  0x6e   : > { %5388 = vsyncadd (%p6281_p7), %s227_s10, 4294907904  ;;  %p6282_p10 = scmp.eq.s32.totalorder %s5478_s18, 0 }
  0x70   : > { %5390 = dma.done.wait (%p6282_p10), [#allocation7], 32   ;;  %p6283_p5 = pmov %p6282_p10 }
  0x71   : > { %p3929_p6 = scmp.ne.s32.totalorder %s5411_s15, 0 }
  0x72   : > { %5392 = vsyncadd (%p6283_p5), [#allocation7], 4294967264  ;;  %v5426_v0 = vmov (!%p3929_p6), 0.0  }
  0x73   : > { %265 = sbr.rel (%p3929_p6) target bundleno = 122 (0x7a), region = 48  ;;  %266 = vst [vmem:[#allocation2] sm:$0xff] (!%p3929_p6), %v5426_v0  ;;  %267 = vst [vmem:[#allocation2 + $0x8] sm:$0xff] (!%p3929_p6), %v5426_v0 }
  0x7a PF: > { %v4518_v1 = vld [vmem:[%s5642_s22 + $0x4] ss:$8 sps:$4 sm:$0xff]   ;;  %v4522_v3 = vld [vmem:[%s5642_s22] ss:$8 sps:$4 sm:$0xff]   ;;  %v4524_v5 = vld [vmem:[%s5642_s22 + $0x14] ss:$8 sps:$4 sm:$0xff]  }
  0x7b   : > { %v4520_v2 = vld [vmem:[%s5642_s22 + $0x104] ss:$8 sps:$4 sm:$0xff]   ;;  %3171 = vmatprep.subr.bf16.mxu0 %v4518_v1  ;;  %v4523_v4 = vld [vmem:[%s5642_s22 + $0x100] ss:$8 sps:$4 sm:$0xff]   ;;  %v4526_v6 = vld [vmem:[%s5642_s22 + $0x114] ss:$8 sps:$4 sm:$0xff]  }
  0x7c   : > { %3212 = vmatprep.subr.bf16.mxu1 %v4520_v2  ;;  %3172 = vmatpush1.bf16.msra.mxu0 %v4522_v3  ;;  %v4528_v7 = vld [vmem:[%s5642_s22 + $0x10] ss:$8 sps:$4 sm:$0xff]   ;;  %v4530_v9 = vld [vmem:[%s5642_s22 + $0x24] ss:$8 sps:$4 sm:$0xff]   ;;  %v4534_v11 = vld [vmem:[%s5642_s22 + $0x20] ss:$8 sps:$4 sm:$0xff]  }
  0x7d   : > { %3213 = vmatpush1.bf16.msra.mxu1 %v4523_v4  ;;  %3173 = vmatprep.subr.bf16.mxu0 %v4524_v5  ;;  %v4529_v8 = vld [vmem:[%s5642_s22 + $0x110] ss:$8 sps:$4 sm:$0xff]   ;;  %v4532_v10 = vld [vmem:[%s5642_s22 + $0x124] ss:$8 sps:$4 sm:$0xff]   ;;  %v4535_v12 = vld [vmem:[%s5642_s22 + $0x120] ss:$8 sps:$4 sm:$0xff]  }
  0x7e   : > { %3214 = vmatprep.subr.bf16.mxu1 %v4526_v6  ;;  %v4536_v13 = vld [vmem:[%s5642_s22 + $0x34] ss:$8 sps:$4 sm:$0xff]   ;;  %v4540_v15 = vld [vmem:[%s5642_s22 + $0x30] ss:$8 sps:$4 sm:$0xff]   ;;  %v4542_v17 = vld [vmem:[%s5642_s22 + $0x44] ss:$8 sps:$4 sm:$0xff]  }
  0x7f   : > { %v4538_v14 = vld [vmem:[%s5642_s22 + $0x134] ss:$8 sps:$4 sm:$0xff]   ;;  %v4541_v16 = vld [vmem:[%s5642_s22 + $0x130] ss:$8 sps:$4 sm:$0xff]   ;;  %v4544_v18 = vld [vmem:[%s5642_s22 + $0x144] ss:$8 sps:$4 sm:$0xff]  }
  0x80   : > { %3174 = vmatpush1.bf16.msra.mxu0 %v4528_v7  ;;  %v4546_v19 = vld [vmem:[%s5642_s22 + $0x40] ss:$8 sps:$4 sm:$0xff]   ;;  %v4548_v21 = vld [vmem:[%s5642_s22 + $0x54] ss:$8 sps:$4 sm:$0xff]   ;;  %v4552_v23 = vld [vmem:[%s5642_s22 + $0x50] ss:$8 sps:$4 sm:$0xff]  }
  0x81   : > { %3215 = vmatpush1.bf16.msra.mxu1 %v4529_v8  ;;  %3175 = vmatprep.subr.bf16.mxu0 %v4530_v9  ;;  %v4547_v20 = vld [vmem:[%s5642_s22 + $0x140] ss:$8 sps:$4 sm:$0xff]   ;;  %v4550_v22 = vld [vmem:[%s5642_s22 + $0x154] ss:$8 sps:$4 sm:$0xff]   ;;  %v4553_v24 = vld [vmem:[%s5642_s22 + $0x150] ss:$8 sps:$4 sm:$0xff]  }
  0x82   : > { %3216 = vmatprep.subr.bf16.mxu1 %v4532_v10  ;;  %v4554_v25 = vld [vmem:[%s5642_s22 + $0x64] ss:$8 sps:$4 sm:$0xff]   ;;  %v4558_v27 = vld [vmem:[%s5642_s22 + $0x60] ss:$8 sps:$4 sm:$0xff]   ;;  %v4560_v29 = vld [vmem:[%s5642_s22 + $0x74] ss:$8 sps:$4 sm:$0xff]  }
  0x83   : > { %v4556_v26 = vld [vmem:[%s5642_s22 + $0x164] ss:$8 sps:$4 sm:$0xff]   ;;  %v4559_v28 = vld [vmem:[%s5642_s22 + $0x160] ss:$8 sps:$4 sm:$0xff]   ;;  %v4562_v30 = vld [vmem:[%s5642_s22 + $0x174] ss:$8 sps:$4 sm:$0xff]  }
  0x84   : > { %3176 = vmatpush1.bf16.msra.mxu0 %v4534_v11  ;;  %v4564_v31 = vld [vmem:[%s5642_s22 + $0x70] ss:$8 sps:$4 sm:$0xff]   ;;  %v4566_v33 = vld [vmem:[%s5642_s22 + $0x84] ss:$8 sps:$4 sm:$0xff]   ;;  %v4570_v35 = vld [vmem:[%s5642_s22 + $0x80] ss:$8 sps:$4 sm:$0xff]  }
  0x85   : > { %3217 = vmatpush1.bf16.msra.mxu1 %v4535_v12  ;;  %3177 = vmatprep.subr.bf16.mxu0 %v4536_v13  ;;  %v4565_v32 = vld [vmem:[%s5642_s22 + $0x170] ss:$8 sps:$4 sm:$0xff]   ;;  %v4568_v34 = vld [vmem:[%s5642_s22 + $0x184] ss:$8 sps:$4 sm:$0xff]   ;;  %v4571_v36 = vld [vmem:[%s5642_s22 + $0x180] ss:$8 sps:$4 sm:$0xff]  }
  0x86   : > { %3218 = vmatprep.subr.bf16.mxu1 %v4538_v14  ;;  %v4572_v37 = vld [vmem:[%s5642_s22 + $0x94] ss:$8 sps:$4 sm:$0xff]   ;;  %v4576_v39 = vld [vmem:[%s5642_s22 + $0x90] ss:$8 sps:$4 sm:$0xff]   ;;  %v4578_v41 = vld [vmem:[%s5642_s22 + $0xa4] ss:$8 sps:$4 sm:$0xff]  }
  0x87   : > { %v4574_v38 = vld [vmem:[%s5642_s22 + $0x194] ss:$8 sps:$4 sm:$0xff]   ;;  %v4577_v40 = vld [vmem:[%s5642_s22 + $0x190] ss:$8 sps:$4 sm:$0xff]   ;;  %v4580_v42 = vld [vmem:[%s5642_s22 + $0x1a4] ss:$8 sps:$4 sm:$0xff]  }
  0x88   : > { %3178 = vmatpush1.bf16.msra.mxu0 %v4540_v15  ;;  %v4582_v43 = vld [vmem:[%s5642_s22 + $0xa0] ss:$8 sps:$4 sm:$0xff]   ;;  %v4584_v45 = vld [vmem:[%s5642_s22 + $0xb4] ss:$8 sps:$4 sm:$0xff]   ;;  %v4588_v50 = vld [vmem:[%s5642_s22 + $0xb0] ss:$8 sps:$4 sm:$0xff]  }
  0x89   : > { %3219 = vmatpush1.bf16.msra.mxu1 %v4541_v16  ;;  %3179 = vmatprep.subr.bf16.mxu0 %v4542_v17  ;;  %v4583_v44 = vld [vmem:[%s5642_s22 + $0x1a0] ss:$8 sps:$4 sm:$0xff]   ;;  %v4586_v46 = vld [vmem:[%s5642_s22 + $0x1b4] ss:$8 sps:$4 sm:$0xff]   ;;  %v4589_v51 = vld [vmem:[%s5642_s22 + $0x1b0] ss:$8 sps:$4 sm:$0xff]  }
  0x8a   : > { %3220 = vmatprep.subr.bf16.mxu1 %v4544_v18  ;;  %v270_v47 = vld [vmem:[%s5635_s30] sm:$0xff]  ;;  %v271_v49 = vld [vmem:[%s5635_s30 + $0x8] sm:$0xff]  ;;  %p4423_p9 = scmp.ne.s32.totalorder %s5411_s15, 3 }
  0x8b   : > { %v3931_v48 = vcombine.high %v270_v47, %v270_v47  ;;  %v3933_v52 = vcombine.high %v271_v49, %v271_v49  ;;  %v4590_v53 = vld [vmem:[%s5642_s22 + $0xc4] ss:$8 sps:$4 sm:$0xff]   ;;  %v4594_v55 = vld [vmem:[%s5642_s22 + $0xc0] ss:$8 sps:$4 sm:$0xff]   ;;  %v4596_v57 = vld [vmem:[%s5642_s22 + $0xd4] ss:$8 sps:$4 sm:$0xff]   ;;  %v3930_v7 = vcombine.low %v270_v47, %v270_v47  ;;  %v3932_v8 = vcombine.low %v271_v49, %v271_v49 }
  0x8c   : > { %3180 = vmatpush1.bf16.msra.mxu0 %v4546_v19  ;;  %v4592_v54 = vld [vmem:[%s5642_s22 + $0x1c4] ss:$8 sps:$4 sm:$0xff]   ;;  %v4595_v56 = vld [vmem:[%s5642_s22 + $0x1c0] ss:$8 sps:$4 sm:$0xff]   ;;  %v4598_v58 = vld [vmem:[%s5642_s22 + $0x1d4] ss:$8 sps:$4 sm:$0xff]  }
  0x8d   : > { %3221 = vmatpush1.bf16.msra.mxu1 %v4547_v20  ;;  %3181 = vmatprep.subr.bf16.mxu0 %v4548_v21  ;;  %v4600_v59 = vld [vmem:[%s5642_s22 + $0xd0] ss:$8 sps:$4 sm:$0xff]   ;;  %v4602_v61 = vld [vmem:[%s5642_s22 + $0xe4] ss:$8 sps:$4 sm:$0xff]   ;;  %v4606_v63 = vld [vmem:[%s5642_s22 + $0xe0] ss:$8 sps:$4 sm:$0xff]  }
  0x8e   : > { %3222 = vmatprep.subr.bf16.mxu1 %v4550_v22  ;;  %3203 = vmatprep.mubr.bf16.mxu0 %v3931_v48  ;;  %v4601_v60 = vld [vmem:[%s5642_s22 + $0x1d0] ss:$8 sps:$4 sm:$0xff]   ;;  %v4604_v62 = vld [vmem:[%s5642_s22 + $0x1e4] ss:$8 sps:$4 sm:$0xff]   ;;  %v4607_v0 = vld [vmem:[%s5642_s22 + $0x1e0] ss:$8 sps:$4 sm:$0xff]  }
  0x8f   : > { %3244 = vmatprep.mubr.bf16.mxu1 %v3933_v52  ;;  %v4608_v1 = vld [vmem:[%s5642_s22 + $0xf4] ss:$8 sps:$4 sm:$0xff]   ;;  %v4612_v3 = vld [vmem:[%s5642_s22 + $0xf0] ss:$8 sps:$4 sm:$0xff]   ;;  %v4620_v5 = vld [vmem:[%s5642_s22 + $0x204] ss:$8 sps:$4 sm:$0xff]  }
  0x90   : > { %3182 = vmatpush1.bf16.msra.mxu0 %v4552_v23  ;;  %v4610_v2 = vld [vmem:[%s5642_s22 + $0x1f4] ss:$8 sps:$4 sm:$0xff]   ;;  %v4613_v4 = vld [vmem:[%s5642_s22 + $0x1f0] ss:$8 sps:$4 sm:$0xff]   ;;  %v4623_v6 = vld [vmem:[%s5642_s22 + $0x304] ss:$8 sps:$4 sm:$0xff]  }
  0x91   : > { %3223 = vmatpush1.bf16.msra.mxu1 %v4553_v24  ;;  %3183 = vmatprep.subr.bf16.mxu0 %v4554_v25  ;;  %v4618_v9 = vld [vmem:[%s5642_s22 + $0x200] ss:$8 sps:$4 sm:$0xff]   ;;  %v4626_v11 = vld [vmem:[%s5642_s22 + $0x214] ss:$8 sps:$4 sm:$0xff]   ;;  %v4624_v13 = vld [vmem:[%s5642_s22 + $0x210] ss:$8 sps:$4 sm:$0xff]  }
  0x92   : > { %3224 = vmatprep.subr.bf16.mxu1 %v4556_v26  ;;  %v4621_v10 = vld [vmem:[%s5642_s22 + $0x300] ss:$8 sps:$4 sm:$0xff]   ;;  %v4629_v12 = vld [vmem:[%s5642_s22 + $0x314] ss:$8 sps:$4 sm:$0xff]   ;;  %v4627_v14 = vld [vmem:[%s5642_s22 + $0x310] ss:$8 sps:$4 sm:$0xff]  }
  0x93   : > { %v4632_v15 = vld [vmem:[%s5642_s22 + $0x224] ss:$8 sps:$4 sm:$0xff]   ;;  %v4630_v17 = vld [vmem:[%s5642_s22 + $0x220] ss:$8 sps:$4 sm:$0xff]   ;;  %v4638_v19 = vld [vmem:[%s5642_s22 + $0x234] ss:$8 sps:$4 sm:$0xff]  }
  0x94   : > { %3184 = vmatpush1.bf16.msra.mxu0 %v4558_v27  ;;  %v4635_v16 = vld [vmem:[%s5642_s22 + $0x324] ss:$8 sps:$4 sm:$0xff]   ;;  %v4633_v18 = vld [vmem:[%s5642_s22 + $0x320] ss:$8 sps:$4 sm:$0xff]   ;;  %v4641_v20 = vld [vmem:[%s5642_s22 + $0x334] ss:$8 sps:$4 sm:$0xff]  }
  0x95   : > { %3225 = vmatpush1.bf16.msra.mxu1 %v4559_v28  ;;  %3185 = vmatprep.subr.bf16.mxu0 %v4560_v29  ;;  %v4636_v21 = vld [vmem:[%s5642_s22 + $0x230] ss:$8 sps:$4 sm:$0xff]   ;;  %v4644_v23 = vld [vmem:[%s5642_s22 + $0x244] ss:$8 sps:$4 sm:$0xff]   ;;  %v4642_v25 = vld [vmem:[%s5642_s22 + $0x240] ss:$8 sps:$4 sm:$0xff]  }
  0x96   : > { %3226 = vmatprep.subr.bf16.mxu1 %v4562_v30  ;;  %v4639_v22 = vld [vmem:[%s5642_s22 + $0x330] ss:$8 sps:$4 sm:$0xff]   ;;  %v4647_v24 = vld [vmem:[%s5642_s22 + $0x344] ss:$8 sps:$4 sm:$0xff]   ;;  %v4645_v26 = vld [vmem:[%s5642_s22 + $0x340] ss:$8 sps:$4 sm:$0xff]  }
  0x97   : > { %v4650_v27 = vld [vmem:[%s5642_s22 + $0x254] ss:$8 sps:$4 sm:$0xff]   ;;  %v4648_v29 = vld [vmem:[%s5642_s22 + $0x250] ss:$8 sps:$4 sm:$0xff]   ;;  %v4683_v52 = vld [vmem:[%s5642_s22 + $0x3a4] ss:$8 sps:$4 sm:$0xff]  }
  0x98   : > { %3186 = vmatpush1.bf16.msra.mxu0 %v4564_v31  ;;  %v4653_v28 = vld [vmem:[%s5642_s22 + $0x354] ss:$8 sps:$4 sm:$0xff]   ;;  %v4651_v30 = vld [vmem:[%s5642_s22 + $0x350] ss:$8 sps:$4 sm:$0xff]   ;;  %v4656_v31 = vld [vmem:[%s5642_s22 + $0x264] ss:$8 sps:$4 sm:$0xff]  }
  0x99   : > { %3227 = vmatpush1.bf16.msra.mxu1 %v4565_v32  ;;  %3187 = vmatprep.subr.bf16.mxu0 %v4566_v33  ;;  %v4659_v32 = vld [vmem:[%s5642_s22 + $0x364] ss:$8 sps:$4 sm:$0xff]   ;;  %v4674_v47 = vld [vmem:[%s5642_s22 + $0x294] ss:$8 sps:$4 sm:$0xff]   ;;  %v4672_v49 = vld [vmem:[%s5642_s22 + $0x290] ss:$8 sps:$4 sm:$0xff]  }
  0x9a   : > { %3228 = vmatprep.subr.bf16.mxu1 %v4568_v34  ;;  %v5746_v33 = vld [vmem:[%s5635_s30 + $0x10] sm:$0xff] }
  0x9b   : > { %v4654_v34 = vld [vmem:[%s5642_s22 + $0x260] ss:$8 sps:$4 sm:$0xff]   ;;  %v4677_v48 = vld [vmem:[%s5642_s22 + $0x394] ss:$8 sps:$4 sm:$0xff]  }
  0x9c   : > { %3188 = vmatpush1.bf16.msra.mxu0 %v4570_v35  ;;  %v4657_v35 = vld [vmem:[%s5642_s22 + $0x360] ss:$8 sps:$4 sm:$0xff]  }
  0x9d   : > { %3229 = vmatpush1.bf16.msra.mxu1 %v4571_v36  ;;  %3189 = vmatprep.subr.bf16.mxu0 %v4572_v37  ;;  %v3935_v36 = vcombine.high %v5746_v33, %v5746_v33  ;;  %v5753_v37 = vld [vmem:[%s5635_s30 + $0x18] sm:$0xff] }
  0x9e   : > { %3230 = vmatprep.subr.bf16.mxu1 %v4574_v38  ;;  %v4662_v38 = vld [vmem:[%s5642_s22 + $0x274] ss:$8 sps:$4 sm:$0xff]  }
  0xa0   : > { %3190 = vmatpush1.bf16.msra.mxu0 %v4576_v39  ;;  %v3937_v39 = vcombine.high %v5753_v37, %v5753_v37 }
  0xa1   : > { %3231 = vmatpush1.bf16.msra.mxu1 %v4577_v40  ;;  %3191 = vmatprep.subr.bf16.mxu0 %v4578_v41  ;;  %v4665_v40 = vld [vmem:[%s5642_s22 + $0x374] ss:$8 sps:$4 sm:$0xff]   ;;  %v4660_v41 = vld [vmem:[%s5642_s22 + $0x270] ss:$8 sps:$4 sm:$0xff]  }
  0xa2   : > { %3232 = vmatprep.subr.bf16.mxu1 %v4580_v42  ;;  %v4663_v42 = vld [vmem:[%s5642_s22 + $0x370] ss:$8 sps:$4 sm:$0xff]  }
  0xa4   : > { %3192 = vmatpush1.bf16.msra.mxu0 %v4582_v43  ;;  %v4668_v43 = vld [vmem:[%s5642_s22 + $0x284] ss:$8 sps:$4 sm:$0xff]  }
  0xa5   : > { %3233 = vmatpush1.bf16.msra.mxu1 %v4583_v44  ;;  %3193 = vmatprep.subr.bf16.mxu0 %v4584_v45  ;;  %v4671_v44 = vld [vmem:[%s5642_s22 + $0x384] ss:$8 sps:$4 sm:$0xff]   ;;  %v4666_v45 = vld [vmem:[%s5642_s22 + $0x280] ss:$8 sps:$4 sm:$0xff]  }
  0xa6   : > { %3234 = vmatprep.subr.bf16.mxu1 %v4586_v46  ;;  %v4669_v46 = vld [vmem:[%s5642_s22 + $0x380] ss:$8 sps:$4 sm:$0xff]  }
  0xa8   : > { %3194 = vmatpush1.bf16.msra.mxu0 %v4588_v50  ;;  %v4675_v50 = vld [vmem:[%s5642_s22 + $0x390] ss:$8 sps:$4 sm:$0xff]  }
  0xa9   : > { %3235 = vmatpush1.bf16.msra.mxu1 %v4589_v51  ;;  %3195 = vmatprep.subr.bf16.mxu0 %v4590_v53  ;;  %v4680_v51 = vld [vmem:[%s5642_s22 + $0x2a4] ss:$8 sps:$4 sm:$0xff]   ;;  %v4678_v53 = vld [vmem:[%s5642_s22 + $0x2a0] ss:$8 sps:$4 sm:$0xff]  }
  0xaa   : > { %3236 = vmatprep.subr.bf16.mxu1 %v4592_v54  ;;  %v4681_v54 = vld [vmem:[%s5642_s22 + $0x3a0] ss:$8 sps:$4 sm:$0xff]  }
  0xac   : > { %3196 = vmatpush1.bf16.msra.mxu0 %v4594_v55  ;;  %v4686_v55 = vld [vmem:[%s5642_s22 + $0x2b4] ss:$8 sps:$4 sm:$0xff]  }
  0xad   : > { %3237 = vmatpush1.bf16.msra.mxu1 %v4595_v56  ;;  %3197 = vmatprep.subr.bf16.mxu0 %v4596_v57  ;;  %v4689_v56 = vld [vmem:[%s5642_s22 + $0x3b4] ss:$8 sps:$4 sm:$0xff]   ;;  %v4684_v57 = vld [vmem:[%s5642_s22 + $0x2b0] ss:$8 sps:$4 sm:$0xff]  }
  0xae   : > { %3238 = vmatprep.subr.bf16.mxu1 %v4598_v58  ;;  %v4687_v58 = vld [vmem:[%s5642_s22 + $0x3b0] ss:$8 sps:$4 sm:$0xff]  }
  0xb0   : > { %3198 = vmatpush1.bf16.msra.mxu0 %v4600_v59  ;;  %v4692_v59 = vld [vmem:[%s5642_s22 + $0x2c4] ss:$8 sps:$4 sm:$0xff]  }
  0xb1   : > { %3239 = vmatpush1.bf16.msra.mxu1 %v4601_v60  ;;  %3199 = vmatprep.subr.bf16.mxu0 %v4602_v61  ;;  %v4695_v60 = vld [vmem:[%s5642_s22 + $0x3c4] ss:$8 sps:$4 sm:$0xff]   ;;  %v4690_v61 = vld [vmem:[%s5642_s22 + $0x2c0] ss:$8 sps:$4 sm:$0xff]  }
  0xb2   : > { %3240 = vmatprep.subr.bf16.mxu1 %v4604_v62  ;;  %v4693_v62 = vld [vmem:[%s5642_s22 + $0x3c0] ss:$8 sps:$4 sm:$0xff]  }
  0xb4   : > { %3200 = vmatpush1.bf16.msra.mxu0 %v4606_v63  ;;  %v4698_v63 = vld [vmem:[%s5642_s22 + $0x2d4] ss:$8 sps:$4 sm:$0xff]  }
  0xb5   : > { %3241 = vmatpush1.bf16.msra.mxu1 %v4607_v0  ;;  %3201 = vmatprep.subr.bf16.mxu0 %v4608_v1  ;;  %v4701_v0 = vld [vmem:[%s5642_s22 + $0x3d4] ss:$8 sps:$4 sm:$0xff]   ;;  %v4696_v1 = vld [vmem:[%s5642_s22 + $0x2d0] ss:$8 sps:$4 sm:$0xff]  }
  0xb6   : > { %3242 = vmatprep.subr.bf16.mxu1 %v4610_v2  ;;  %v4699_v2 = vld [vmem:[%s5642_s22 + $0x3d0] ss:$8 sps:$4 sm:$0xff]  }
  0xb8   : > { %3202 = vmatpush1.bf16.msra.mxu0 %v4612_v3  ;;  %v4704_v3 = vld [vmem:[%s5642_s22 + $0x2e4] ss:$8 sps:$4 sm:$0xff]  }
  0xb9   : > { %3243 = vmatpush1.bf16.msra.mxu1 %v4613_v4  ;;  %3253 = vmatprep.subr.bf16.mxu0 %v4620_v5  ;;  %v4707_v4 = vld [vmem:[%s5642_s22 + $0x3e4] ss:$8 sps:$4 sm:$0xff]   ;;  %v4702_v5 = vld [vmem:[%s5642_s22 + $0x2e0] ss:$8 sps:$4 sm:$0xff]  }
  0xba   : > { %3294 = vmatprep.subr.bf16.mxu1 %v4623_v6  ;;  %v4705_v6 = vld [vmem:[%s5642_s22 + $0x3e0] ss:$8 sps:$4 sm:$0xff]  }
  0xbb   : > { %3204 = vmatmul.mubr.bf16.vlgmr.msra.gmra.mrb[0].mxu0 %v3930_v7  ;;  %v4710_v7 = vld [vmem:[%s5642_s22 + $0x2f4] ss:$8 sps:$4 sm:$0xff]  }
  0xbc   : > { %3245 = vmatmul.mubr.bf16.vlgmr.msra.gmra.mrb[0].mxu1 %v3932_v8  ;;  %3254 = vmatpush1.bf16.msra.mxu0 %v4618_v9  ;;  %v4713_v8 = vld [vmem:[%s5642_s22 + $0x3f4] ss:$8 sps:$4 sm:$0xff]   ;;  %v4708_v9 = vld [vmem:[%s5642_s22 + $0x2f0] ss:$8 sps:$4 sm:$0xff]  }
  0xbd   : > { %3295 = vmatpush1.bf16.msra.mxu1 %v4621_v10  ;;  %3255 = vmatprep.subr.bf16.mxu0 %v4626_v11  ;;  %v4711_v10 = vld [vmem:[%s5642_s22 + $0x3f0] ss:$8 sps:$4 sm:$0xff]   ;;  %v4718_v11 = vld [vmem:[%s5642_s22 + $0x404] ss:$8 sps:$4 sm:$0xff]  }
  0xbe   : > { %3296 = vmatprep.subr.bf16.mxu1 %v4629_v12  ;;  %3285 = vmatprep.mubr.bf16.mxu0 %v3935_v36  ;;  %v4723_v12 = vld [vmem:[%s5642_s22 + $0x504] ss:$8 sps:$4 sm:$0xff]   ;;  %v4745_v36 = vld [vmem:[%s5642_s22 + $0x540] ss:$8 sps:$4 sm:$0xff]  }
  0xbf   : > { %3326 = vmatprep.mubr.bf16.mxu1 %v3937_v39  ;;  %v4748_v39 = vld [vmem:[%s5642_s22 + $0x450] ss:$8 sps:$4 sm:$0xff]  }
  0xc0   : > { %3256 = vmatpush1.bf16.msra.mxu0 %v4624_v13  ;;  %v3934_v13 = vcombine.low %v5746_v33, %v5746_v33  ;;  %v4744_v33 = vld [vmem:[%s5642_s22 + $0x444] ss:$8 sps:$4 sm:$0xff]  }
  0xc1   : > { %3297 = vmatpush1.bf16.msra.mxu1 %v4627_v14  ;;  %3257 = vmatprep.subr.bf16.mxu0 %v4632_v15  ;;  %v4716_v14 = vld [vmem:[%s5642_s22 + $0x400] ss:$8 sps:$4 sm:$0xff]   ;;  %v3936_v15 = vcombine.low %v5753_v37, %v5753_v37  ;;  %v4750_v37 = vld [vmem:[%s5642_s22 + $0x454] ss:$8 sps:$4 sm:$0xff]  }
  0xc2   : > { %3298 = vmatprep.subr.bf16.mxu1 %v4635_v16  ;;  %v4721_v16 = vld [vmem:[%s5642_s22 + $0x500] ss:$8 sps:$4 sm:$0xff]  }
  0xc4   : > { %3258 = vmatpush1.bf16.msra.mxu0 %v4630_v17  ;;  %v4726_v17 = vld [vmem:[%s5642_s22 + $0x414] ss:$8 sps:$4 sm:$0xff]  }
  0xc5   : > { %3299 = vmatpush1.bf16.msra.mxu1 %v4633_v18  ;;  %3259 = vmatprep.subr.bf16.mxu0 %v4638_v19  ;;  %v4729_v18 = vld [vmem:[%s5642_s22 + $0x514] ss:$8 sps:$4 sm:$0xff]  }
  0xc6   : > { %3300 = vmatprep.subr.bf16.mxu1 %v4641_v20  ;;  %v5804_v19 = vld [vmem:[%s5635_s30 + $0x20] sm:$0xff] }
  0xc7   : > { %v3939_v20 = vcombine.high %v5804_v19, %v5804_v19 }
  0xc8   : > { %3260 = vmatpush1.bf16.msra.mxu0 %v4636_v21  ;;  %v5809_v21 = vld [vmem:[%s5635_s30 + $0x28] sm:$0xff] }
  0xc9   : > { %3301 = vmatpush1.bf16.msra.mxu1 %v4639_v22  ;;  %3261 = vmatprep.subr.bf16.mxu0 %v4644_v23  ;;  %v4724_v22 = vld [vmem:[%s5642_s22 + $0x410] ss:$8 sps:$4 sm:$0xff]  }
  0xca   : > { %3302 = vmatprep.subr.bf16.mxu1 %v4647_v24  ;;  %v4727_v23 = vld [vmem:[%s5642_s22 + $0x510] ss:$8 sps:$4 sm:$0xff]   ;;  %v3941_v24 = vcombine.high %v5809_v21, %v5809_v21 }
  0xcc   : > { %3262 = vmatpush1.bf16.msra.mxu0 %v4642_v25  ;;  %v4732_v25 = vld [vmem:[%s5642_s22 + $0x424] ss:$8 sps:$4 sm:$0xff]  }
  0xcd   : > { %3303 = vmatpush1.bf16.msra.mxu1 %v4645_v26  ;;  %3263 = vmatprep.subr.bf16.mxu0 %v4650_v27  ;;  %v4735_v26 = vld [vmem:[%s5642_s22 + $0x524] ss:$8 sps:$4 sm:$0xff]   ;;  %v4730_v27 = vld [vmem:[%s5642_s22 + $0x420] ss:$8 sps:$4 sm:$0xff]  }
  0xce   : > { %3304 = vmatprep.subr.bf16.mxu1 %v4653_v28  ;;  %v4733_v28 = vld [vmem:[%s5642_s22 + $0x520] ss:$8 sps:$4 sm:$0xff]  }
  0xd0   : > { %3264 = vmatpush1.bf16.msra.mxu0 %v4648_v29  ;;  %v4738_v29 = vld [vmem:[%s5642_s22 + $0x434] ss:$8 sps:$4 sm:$0xff]  }
  0xd1   : > { %3305 = vmatpush1.bf16.msra.mxu1 %v4651_v30  ;;  %3265 = vmatprep.subr.bf16.mxu0 %v4656_v31  ;;  %v4741_v30 = vld [vmem:[%s5642_s22 + $0x534] ss:$8 sps:$4 sm:$0xff]   ;;  %v4736_v31 = vld [vmem:[%s5642_s22 + $0x430] ss:$8 sps:$4 sm:$0xff]  }
  0xd2   : > { %3306 = vmatprep.subr.bf16.mxu1 %v4659_v32  ;;  %v4739_v32 = vld [vmem:[%s5642_s22 + $0x530] ss:$8 sps:$4 sm:$0xff]  }
  0xd4   : > { %3266 = vmatpush1.bf16.msra.mxu0 %v4654_v34  ;;  %v4747_v34 = vld [vmem:[%s5642_s22 + $0x544] ss:$8 sps:$4 sm:$0xff]  }
  0xd5   : > { %3307 = vmatpush1.bf16.msra.mxu1 %v4657_v35  ;;  %3267 = vmatprep.subr.bf16.mxu0 %v4662_v38  ;;  %v4742_v35 = vld [vmem:[%s5642_s22 + $0x440] ss:$8 sps:$4 sm:$0xff]   ;;  %v4753_v38 = vld [vmem:[%s5642_s22 + $0x554] ss:$8 sps:$4 sm:$0xff]  }
  0xd6   : > { %3308 = vmatprep.subr.bf16.mxu1 %v4665_v40  ;;  %v4751_v40 = vld [vmem:[%s5642_s22 + $0x550] ss:$8 sps:$4 sm:$0xff]  }
  0xd8   : > { %3268 = vmatpush1.bf16.msra.mxu0 %v4660_v41  ;;  %v4756_v41 = vld [vmem:[%s5642_s22 + $0x464] ss:$8 sps:$4 sm:$0xff]  }
  0xd9   : > { %3309 = vmatpush1.bf16.msra.mxu1 %v4663_v42  ;;  %3269 = vmatprep.subr.bf16.mxu0 %v4668_v43  ;;  %v4759_v42 = vld [vmem:[%s5642_s22 + $0x564] ss:$8 sps:$4 sm:$0xff]   ;;  %v4754_v43 = vld [vmem:[%s5642_s22 + $0x460] ss:$8 sps:$4 sm:$0xff]  }
  0xda   : > { %3310 = vmatprep.subr.bf16.mxu1 %v4671_v44  ;;  %v4757_v44 = vld [vmem:[%s5642_s22 + $0x560] ss:$8 sps:$4 sm:$0xff]  }
  0xdc   : > { %3270 = vmatpush1.bf16.msra.mxu0 %v4666_v45  ;;  %v4762_v45 = vld [vmem:[%s5642_s22 + $0x474] ss:$8 sps:$4 sm:$0xff]  }
  0xdd   : > { %3311 = vmatpush1.bf16.msra.mxu1 %v4669_v46  ;;  %3271 = vmatprep.subr.bf16.mxu0 %v4674_v47  ;;  %v4765_v46 = vld [vmem:[%s5642_s22 + $0x574] ss:$8 sps:$4 sm:$0xff]   ;;  %v4760_v47 = vld [vmem:[%s5642_s22 + $0x470] ss:$8 sps:$4 sm:$0xff]  }
  0xde   : > { %3312 = vmatprep.subr.bf16.mxu1 %v4677_v48  ;;  %v4763_v48 = vld [vmem:[%s5642_s22 + $0x570] ss:$8 sps:$4 sm:$0xff]  }
  0xe0   : > { %3272 = vmatpush1.bf16.msra.mxu0 %v4672_v49  ;;  %v4768_v49 = vld [vmem:[%s5642_s22 + $0x484] ss:$8 sps:$4 sm:$0xff]  }
  0xe1   : > { %3313 = vmatpush1.bf16.msra.mxu1 %v4675_v50  ;;  %3273 = vmatprep.subr.bf16.mxu0 %v4680_v51  ;;  %v4771_v50 = vld [vmem:[%s5642_s22 + $0x584] ss:$8 sps:$4 sm:$0xff]   ;;  %v4766_v51 = vld [vmem:[%s5642_s22 + $0x480] ss:$8 sps:$4 sm:$0xff]  }
  0xe2   : > { %3314 = vmatprep.subr.bf16.mxu1 %v4683_v52  ;;  %v4769_v52 = vld [vmem:[%s5642_s22 + $0x580] ss:$8 sps:$4 sm:$0xff]  }
  0xe4   : > { %3274 = vmatpush1.bf16.msra.mxu0 %v4678_v53  ;;  %v4774_v53 = vld [vmem:[%s5642_s22 + $0x494] ss:$8 sps:$4 sm:$0xff]  }
  0xe5   : > { %3315 = vmatpush1.bf16.msra.mxu1 %v4681_v54  ;;  %3275 = vmatprep.subr.bf16.mxu0 %v4686_v55  ;;  %v4777_v54 = vld [vmem:[%s5642_s22 + $0x594] ss:$8 sps:$4 sm:$0xff]   ;;  %v4772_v55 = vld [vmem:[%s5642_s22 + $0x490] ss:$8 sps:$4 sm:$0xff]  }
  0xe6   : > { %3316 = vmatprep.subr.bf16.mxu1 %v4689_v56  ;;  %v4775_v56 = vld [vmem:[%s5642_s22 + $0x590] ss:$8 sps:$4 sm:$0xff]  }
  0xe8   : > { %3276 = vmatpush1.bf16.msra.mxu0 %v4684_v57  ;;  %v4780_v57 = vld [vmem:[%s5642_s22 + $0x4a4] ss:$8 sps:$4 sm:$0xff]  }
  0xe9   : > { %3317 = vmatpush1.bf16.msra.mxu1 %v4687_v58  ;;  %3277 = vmatprep.subr.bf16.mxu0 %v4692_v59  ;;  %v4783_v58 = vld [vmem:[%s5642_s22 + $0x5a4] ss:$8 sps:$4 sm:$0xff]   ;;  %v4778_v59 = vld [vmem:[%s5642_s22 + $0x4a0] ss:$8 sps:$4 sm:$0xff]  }
  0xea   : > { %3318 = vmatprep.subr.bf16.mxu1 %v4695_v60  ;;  %v4781_v60 = vld [vmem:[%s5642_s22 + $0x5a0] ss:$8 sps:$4 sm:$0xff]  }
  0xec   : > { %3278 = vmatpush1.bf16.msra.mxu0 %v4690_v61  ;;  %v4786_v61 = vld [vmem:[%s5642_s22 + $0x4b4] ss:$8 sps:$4 sm:$0xff]  }
  0xed   : > { %3319 = vmatpush1.bf16.msra.mxu1 %v4693_v62  ;;  %3279 = vmatprep.subr.bf16.mxu0 %v4698_v63  ;;  %v4789_v62 = vld [vmem:[%s5642_s22 + $0x5b4] ss:$8 sps:$4 sm:$0xff]   ;;  %v4784_v63 = vld [vmem:[%s5642_s22 + $0x4b0] ss:$8 sps:$4 sm:$0xff]  }
  0xee   : > { %3320 = vmatprep.subr.bf16.mxu1 %v4701_v0  ;;  %v4787_v0 = vld [vmem:[%s5642_s22 + $0x5b0] ss:$8 sps:$4 sm:$0xff]  }
  0xf0   : > { %3280 = vmatpush1.bf16.msra.mxu0 %v4696_v1  ;;  %v4792_v1 = vld [vmem:[%s5642_s22 + $0x4c4] ss:$8 sps:$4 sm:$0xff]  }
  0xf1   : > { %3321 = vmatpush1.bf16.msra.mxu1 %v4699_v2  ;;  %3281 = vmatprep.subr.bf16.mxu0 %v4704_v3  ;;  %v4795_v2 = vld [vmem:[%s5642_s22 + $0x5c4] ss:$8 sps:$4 sm:$0xff]   ;;  %v4790_v3 = vld [vmem:[%s5642_s22 + $0x4c0] ss:$8 sps:$4 sm:$0xff]  }
  0xf2   : > { %3322 = vmatprep.subr.bf16.mxu1 %v4707_v4  ;;  %v4793_v4 = vld [vmem:[%s5642_s22 + $0x5c0] ss:$8 sps:$4 sm:$0xff]  }
  0xf4   : > { %3282 = vmatpush1.bf16.msra.mxu0 %v4702_v5  ;;  %v4798_v5 = vld [vmem:[%s5642_s22 + $0x4d4] ss:$8 sps:$4 sm:$0xff]  }
  0xf5   : > { %3323 = vmatpush1.bf16.msra.mxu1 %v4705_v6  ;;  %3283 = vmatprep.subr.bf16.mxu0 %v4710_v7  ;;  %v4801_v6 = vld [vmem:[%s5642_s22 + $0x5d4] ss:$8 sps:$4 sm:$0xff]   ;;  %v4796_v7 = vld [vmem:[%s5642_s22 + $0x4d0] ss:$8 sps:$4 sm:$0xff]  }
  0xf6   : > { %3324 = vmatprep.subr.bf16.mxu1 %v4713_v8  ;;  %v4799_v8 = vld [vmem:[%s5642_s22 + $0x5d0] ss:$8 sps:$4 sm:$0xff]  }
  0xf8   : > { %3284 = vmatpush1.bf16.msra.mxu0 %v4708_v9  ;;  %v4804_v9 = vld [vmem:[%s5642_s22 + $0x4e4] ss:$8 sps:$4 sm:$0xff]  }
  0xf9   : > { %3325 = vmatpush1.bf16.msra.mxu1 %v4711_v10  ;;  %3335 = vmatprep.subr.bf16.mxu0 %v4718_v11  ;;  %v4807_v10 = vld [vmem:[%s5642_s22 + $0x5e4] ss:$8 sps:$4 sm:$0xff]   ;;  %v4802_v11 = vld [vmem:[%s5642_s22 + $0x4e0] ss:$8 sps:$4 sm:$0xff]  }
  0xfa   : > { %3376 = vmatprep.subr.bf16.mxu1 %v4723_v12  ;;  %v4805_v12 = vld [vmem:[%s5642_s22 + $0x5e0] ss:$8 sps:$4 sm:$0xff]  }
  0xfb   : > { %3286 = vmatmul.mubr.bf16.vlgmr.msra.gmra.mrb[4].mxu0 %v3934_v13  ;;  %v4810_v13 = vld [vmem:[%s5642_s22 + $0x4f4] ss:$8 sps:$4 sm:$0xff]  }
  0xfc   : > { %3327 = vmatmul.mubr.bf16.vlgmr.msra.gmra.mrb[4].mxu1 %v3936_v15  ;;  %3336 = vmatpush1.bf16.msra.mxu0 %v4716_v14  ;;  %v4813_v14 = vld [vmem:[%s5642_s22 + $0x5f4] ss:$8 sps:$4 sm:$0xff]   ;;  %v4808_v15 = vld [vmem:[%s5642_s22 + $0x4f0] ss:$8 sps:$4 sm:$0xff]  }
  0xfd   : > { %3377 = vmatpush1.bf16.msra.mxu1 %v4721_v16  ;;  %3337 = vmatprep.subr.bf16.mxu0 %v4726_v17  ;;  %v4811_v16 = vld [vmem:[%s5642_s22 + $0x5f0] ss:$8 sps:$4 sm:$0xff]   ;;  %v4818_v17 = vld [vmem:[%s5642_s22 + $0x604] ss:$8 sps:$4 sm:$0xff]  }
  0xfe   : > { %3378 = vmatprep.subr.bf16.mxu1 %v4729_v18  ;;  %3367 = vmatprep.mubr.bf16.mxu0 %v3939_v20  ;;  %v4823_v18 = vld [vmem:[%s5642_s22 + $0x704] ss:$8 sps:$4 sm:$0xff]   ;;  %v4816_v20 = vld [vmem:[%s5642_s22 + $0x600] ss:$8 sps:$4 sm:$0xff]  }
  0xff   : > { %3408 = vmatprep.mubr.bf16.mxu1 %v3941_v24  ;;  %v3940_v24 = vcombine.low %v5809_v21, %v5809_v21 }
 0x100   : > { %3338 = vmatpush1.bf16.msra.mxu0 %v4724_v22  ;;  %v4821_v22 = vld [vmem:[%s5642_s22 + $0x700] ss:$8 sps:$4 sm:$0xff]  }
 0x101   : > { %3379 = vmatpush1.bf16.msra.mxu1 %v4727_v23  ;;  %3339 = vmatprep.subr.bf16.mxu0 %v4732_v25  ;;  %v3938_v23 = vcombine.low %v5804_v19, %v5804_v19  ;;  %v5880_v25 = vld [vmem:[%s5635_s30 + $0x30] sm:$0xff] }
 0x102   : > { %3380 = vmatprep.subr.bf16.mxu1 %v4735_v26  ;;  %v5883_v26 = vld [vmem:[%s5635_s30 + $0x38] sm:$0xff]  ;;  %v3943_v19 = vcombine.high %v5880_v25, %v5880_v25 }
 0x103   : > { %v3945_v21 = vcombine.high %v5883_v26, %v5883_v26 }
 0x104   : > { %3340 = vmatpush1.bf16.msra.mxu0 %v4730_v27  ;;  %v4826_v27 = vld [vmem:[%s5642_s22 + $0x614] ss:$8 sps:$4 sm:$0xff]  }
 0x105   : > { %3381 = vmatpush1.bf16.msra.mxu1 %v4733_v28  ;;  %3341 = vmatprep.subr.bf16.mxu0 %v4738_v29  ;;  %v4829_v28 = vld [vmem:[%s5642_s22 + $0x714] ss:$8 sps:$4 sm:$0xff]   ;;  %v4824_v29 = vld [vmem:[%s5642_s22 + $0x610] ss:$8 sps:$4 sm:$0xff]  }
 0x106   : > { %3382 = vmatprep.subr.bf16.mxu1 %v4741_v30  ;;  %v4827_v30 = vld [vmem:[%s5642_s22 + $0x710] ss:$8 sps:$4 sm:$0xff]  }
 0x108   : > { %3342 = vmatpush1.bf16.msra.mxu0 %v4736_v31  ;;  %v4832_v31 = vld [vmem:[%s5642_s22 + $0x624] ss:$8 sps:$4 sm:$0xff]  }
 0x109   : > { %3383 = vmatpush1.bf16.msra.mxu1 %v4739_v32  ;;  %3343 = vmatprep.subr.bf16.mxu0 %v4744_v33  ;;  %v4835_v32 = vld [vmem:[%s5642_s22 + $0x724] ss:$8 sps:$4 sm:$0xff]   ;;  %v4830_v33 = vld [vmem:[%s5642_s22 + $0x620] ss:$8 sps:$4 sm:$0xff]  }
 0x10a   : > { %3384 = vmatprep.subr.bf16.mxu1 %v4747_v34  ;;  %v4833_v34 = vld [vmem:[%s5642_s22 + $0x720] ss:$8 sps:$4 sm:$0xff]  }
 0x10c   : > { %3344 = vmatpush1.bf16.msra.mxu0 %v4742_v35  ;;  %v4838_v35 = vld [vmem:[%s5642_s22 + $0x634] ss:$8 sps:$4 sm:$0xff]  }
 0x10d   : > { %3385 = vmatpush1.bf16.msra.mxu1 %v4745_v36  ;;  %3345 = vmatprep.subr.bf16.mxu0 %v4750_v37  ;;  %v4841_v36 = vld [vmem:[%s5642_s22 + $0x734] ss:$8 sps:$4 sm:$0xff]   ;;  %v4836_v37 = vld [vmem:[%s5642_s22 + $0x630] ss:$8 sps:$4 sm:$0xff]  }
 0x10e   : > { %3386 = vmatprep.subr.bf16.mxu1 %v4753_v38  ;;  %v4839_v38 = vld [vmem:[%s5642_s22 + $0x730] ss:$8 sps:$4 sm:$0xff]  }
 0x110   : > { %3346 = vmatpush1.bf16.msra.mxu0 %v4748_v39  ;;  %v4844_v39 = vld [vmem:[%s5642_s22 + $0x644] ss:$8 sps:$4 sm:$0xff]  }
 0x111   : > { %3387 = vmatpush1.bf16.msra.mxu1 %v4751_v40  ;;  %3347 = vmatprep.subr.bf16.mxu0 %v4756_v41  ;;  %v4847_v40 = vld [vmem:[%s5642_s22 + $0x744] ss:$8 sps:$4 sm:$0xff]   ;;  %v4842_v41 = vld [vmem:[%s5642_s22 + $0x640] ss:$8 sps:$4 sm:$0xff]  }
 0x112   : > { %3388 = vmatprep.subr.bf16.mxu1 %v4759_v42  ;;  %v4845_v42 = vld [vmem:[%s5642_s22 + $0x740] ss:$8 sps:$4 sm:$0xff]  }
 0x114   : > { %3348 = vmatpush1.bf16.msra.mxu0 %v4754_v43  ;;  %v4850_v43 = vld [vmem:[%s5642_s22 + $0x654] ss:$8 sps:$4 sm:$0xff]  }
 0x115   : > { %3389 = vmatpush1.bf16.msra.mxu1 %v4757_v44  ;;  %3349 = vmatprep.subr.bf16.mxu0 %v4762_v45  ;;  %v4853_v44 = vld [vmem:[%s5642_s22 + $0x754] ss:$8 sps:$4 sm:$0xff]   ;;  %v4848_v45 = vld [vmem:[%s5642_s22 + $0x650] ss:$8 sps:$4 sm:$0xff]  }
 0x116   : > { %3390 = vmatprep.subr.bf16.mxu1 %v4765_v46  ;;  %v4851_v46 = vld [vmem:[%s5642_s22 + $0x750] ss:$8 sps:$4 sm:$0xff]  }
 0x118   : > { %3350 = vmatpush1.bf16.msra.mxu0 %v4760_v47  ;;  %v4856_v47 = vld [vmem:[%s5642_s22 + $0x664] ss:$8 sps:$4 sm:$0xff]  }
 0x119   : > { %3391 = vmatpush1.bf16.msra.mxu1 %v4763_v48  ;;  %3351 = vmatprep.subr.bf16.mxu0 %v4768_v49  ;;  %v4859_v48 = vld [vmem:[%s5642_s22 + $0x764] ss:$8 sps:$4 sm:$0xff]   ;;  %v4854_v49 = vld [vmem:[%s5642_s22 + $0x660] ss:$8 sps:$4 sm:$0xff]  }
 0x11a   : > { %3392 = vmatprep.subr.bf16.mxu1 %v4771_v50  ;;  %v4857_v50 = vld [vmem:[%s5642_s22 + $0x760] ss:$8 sps:$4 sm:$0xff]  }
 0x11c   : > { %3352 = vmatpush1.bf16.msra.mxu0 %v4766_v51  ;;  %v4862_v51 = vld [vmem:[%s5642_s22 + $0x674] ss:$8 sps:$4 sm:$0xff]  }
 0x11d   : > { %3393 = vmatpush1.bf16.msra.mxu1 %v4769_v52  ;;  %3353 = vmatprep.subr.bf16.mxu0 %v4774_v53  ;;  %v4865_v52 = vld [vmem:[%s5642_s22 + $0x774] ss:$8 sps:$4 sm:$0xff]   ;;  %v4860_v53 = vld [vmem:[%s5642_s22 + $0x670] ss:$8 sps:$4 sm:$0xff]  }
 0x11e   : > { %3394 = vmatprep.subr.bf16.mxu1 %v4777_v54  ;;  %v4863_v54 = vld [vmem:[%s5642_s22 + $0x770] ss:$8 sps:$4 sm:$0xff]  }
 0x120   : > { %3354 = vmatpush1.bf16.msra.mxu0 %v4772_v55  ;;  %v4868_v55 = vld [vmem:[%s5642_s22 + $0x684] ss:$8 sps:$4 sm:$0xff]  }
 0x121   : > { %3395 = vmatpush1.bf16.msra.mxu1 %v4775_v56  ;;  %3355 = vmatprep.subr.bf16.mxu0 %v4780_v57  ;;  %v4871_v56 = vld [vmem:[%s5642_s22 + $0x784] ss:$8 sps:$4 sm:$0xff]   ;;  %v4866_v57 = vld [vmem:[%s5642_s22 + $0x680] ss:$8 sps:$4 sm:$0xff]  }
 0x122   : > { %3396 = vmatprep.subr.bf16.mxu1 %v4783_v58  ;;  %v4869_v58 = vld [vmem:[%s5642_s22 + $0x780] ss:$8 sps:$4 sm:$0xff]  }
 0x124   : > { %3356 = vmatpush1.bf16.msra.mxu0 %v4778_v59  ;;  %v4874_v59 = vld [vmem:[%s5642_s22 + $0x694] ss:$8 sps:$4 sm:$0xff]  }
 0x125   : > { %3397 = vmatpush1.bf16.msra.mxu1 %v4781_v60  ;;  %3357 = vmatprep.subr.bf16.mxu0 %v4786_v61  ;;  %v4877_v60 = vld [vmem:[%s5642_s22 + $0x794] ss:$8 sps:$4 sm:$0xff]   ;;  %v4872_v61 = vld [vmem:[%s5642_s22 + $0x690] ss:$8 sps:$4 sm:$0xff]  }
 0x126   : > { %3398 = vmatprep.subr.bf16.mxu1 %v4789_v62  ;;  %v4875_v62 = vld [vmem:[%s5642_s22 + $0x790] ss:$8 sps:$4 sm:$0xff]  }
 0x128   : > { %3358 = vmatpush1.bf16.msra.mxu0 %v4784_v63  ;;  %v4880_v63 = vld [vmem:[%s5642_s22 + $0x6a4] ss:$8 sps:$4 sm:$0xff]  }
 0x129   : > { %3399 = vmatpush1.bf16.msra.mxu1 %v4787_v0  ;;  %3359 = vmatprep.subr.bf16.mxu0 %v4792_v1  ;;  %v4883_v0 = vld [vmem:[%s5642_s22 + $0x7a4] ss:$8 sps:$4 sm:$0xff]   ;;  %v4878_v1 = vld [vmem:[%s5642_s22 + $0x6a0] ss:$8 sps:$4 sm:$0xff]  }
 0x12a   : > { %3400 = vmatprep.subr.bf16.mxu1 %v4795_v2  ;;  %v4881_v2 = vld [vmem:[%s5642_s22 + $0x7a0] ss:$8 sps:$4 sm:$0xff]  }
 0x12c   : > { %3360 = vmatpush1.bf16.msra.mxu0 %v4790_v3  ;;  %v4886_v3 = vld [vmem:[%s5642_s22 + $0x6b4] ss:$8 sps:$4 sm:$0xff]  }
 0x12d   : > { %3401 = vmatpush1.bf16.msra.mxu1 %v4793_v4  ;;  %3361 = vmatprep.subr.bf16.mxu0 %v4798_v5  ;;  %v4889_v4 = vld [vmem:[%s5642_s22 + $0x7b4] ss:$8 sps:$4 sm:$0xff]   ;;  %v4884_v5 = vld [vmem:[%s5642_s22 + $0x6b0] ss:$8 sps:$4 sm:$0xff]  }
 0x12e   : > { %3402 = vmatprep.subr.bf16.mxu1 %v4801_v6  ;;  %v4887_v6 = vld [vmem:[%s5642_s22 + $0x7b0] ss:$8 sps:$4 sm:$0xff]  }
 0x130   : > { %3362 = vmatpush1.bf16.msra.mxu0 %v4796_v7  ;;  %v4892_v7 = vld [vmem:[%s5642_s22 + $0x6c4] ss:$8 sps:$4 sm:$0xff]  }
 0x131   : > { %3403 = vmatpush1.bf16.msra.mxu1 %v4799_v8  ;;  %3363 = vmatprep.subr.bf16.mxu0 %v4804_v9  ;;  %v4895_v8 = vld [vmem:[%s5642_s22 + $0x7c4] ss:$8 sps:$4 sm:$0xff]   ;;  %v4890_v9 = vld [vmem:[%s5642_s22 + $0x6c0] ss:$8 sps:$4 sm:$0xff]  }
 0x132   : > { %3404 = vmatprep.subr.bf16.mxu1 %v4807_v10  ;;  %v4893_v10 = vld [vmem:[%s5642_s22 + $0x7c0] ss:$8 sps:$4 sm:$0xff]  }
 0x134   : > { %3364 = vmatpush1.bf16.msra.mxu0 %v4802_v11  ;;  %v4898_v11 = vld [vmem:[%s5642_s22 + $0x6d4] ss:$8 sps:$4 sm:$0xff]  }
 0x135   : > { %3405 = vmatpush1.bf16.msra.mxu1 %v4805_v12  ;;  %3365 = vmatprep.subr.bf16.mxu0 %v4810_v13  ;;  %v4901_v12 = vld [vmem:[%s5642_s22 + $0x7d4] ss:$8 sps:$4 sm:$0xff]   ;;  %v4896_v13 = vld [vmem:[%s5642_s22 + $0x6d0] ss:$8 sps:$4 sm:$0xff]  }
 0x136   : > { %3406 = vmatprep.subr.bf16.mxu1 %v4813_v14  ;;  %v4899_v14 = vld [vmem:[%s5642_s22 + $0x7d0] ss:$8 sps:$4 sm:$0xff]  }
 0x138   : > { %3366 = vmatpush1.bf16.msra.mxu0 %v4808_v15  ;;  %v4904_v15 = vld [vmem:[%s5642_s22 + $0x6e4] ss:$8 sps:$4 sm:$0xff]  }
 0x139   : > { %3407 = vmatpush1.bf16.msra.mxu1 %v4811_v16  ;;  %3417 = vmatprep.subr.bf16.mxu0 %v4818_v17  ;;  %v4907_v16 = vld [vmem:[%s5642_s22 + $0x7e4] ss:$8 sps:$4 sm:$0xff]   ;;  %v4902_v17 = vld [vmem:[%s5642_s22 + $0x6e0] ss:$8 sps:$4 sm:$0xff]  }
 0x13a   : > { %3458 = vmatprep.subr.bf16.mxu1 %v4823_v18  ;;  %v4905_v18 = vld [vmem:[%s5642_s22 + $0x7e0] ss:$8 sps:$4 sm:$0xff]  }
 0x13b   : > { %3368 = vmatmul.mubr.bf16.vlgmr.msra.gmra.mrb[8].mxu0 %v3938_v23  ;;  %v4908_v23 = vld [vmem:[%s5642_s22 + $0x6f0] ss:$8 sps:$4 sm:$0xff]  }
 0x13c   : > { %3409 = vmatmul.mubr.bf16.vlgmr.msra.gmra.mrb[8].mxu1 %v3940_v24  ;;  %3418 = vmatpush1.bf16.msra.mxu0 %v4816_v20  ;;  %v4910_v20 = vld [vmem:[%s5642_s22 + $0x6f4] ss:$8 sps:$4 sm:$0xff]   ;;  %v4911_v24 = vld [vmem:[%s5642_s22 + $0x7f0] ss:$8 sps:$4 sm:$0xff]  }
 0x13d   : > { %3459 = vmatpush1.bf16.msra.mxu1 %v4821_v22  ;;  %3419 = vmatprep.subr.bf16.mxu0 %v4826_v27  ;;  %v4913_v22 = vld [vmem:[%s5642_s22 + $0x7f4] ss:$8 sps:$4 sm:$0xff]   ;;  %v4918_v27 = vld [vmem:[%s5642_s22 + $0x804] ss:$8 sps:$4 sm:$0xff]  }
 0x13e   : > { %3460 = vmatprep.subr.bf16.mxu1 %v4829_v28  ;;  %3449 = vmatprep.mubr.bf16.mxu0 %v3943_v19  ;;  %v4923_v28 = vld [vmem:[%s5642_s22 + $0x904] ss:$8 sps:$4 sm:$0xff]  }
 0x13f   : > { %3490 = vmatprep.mubr.bf16.mxu1 %v3945_v21  ;;  %v5952_v19 = vld [vmem:[%s5635_s30 + $0x40] sm:$0xff]  ;;  %v3942_v21 = vcombine.low %v5880_v25, %v5880_v25 }
 0x140   : > { %3420 = vmatpush1.bf16.msra.mxu0 %v4824_v29  ;;  %v3944_v29 = vcombine.low %v5883_v26, %v5883_v26  ;;  %v3947_v25 = vcombine.high %v5952_v19, %v5952_v19 }
 0x141   : > { %3461 = vmatpush1.bf16.msra.mxu1 %v4827_v30  ;;  %3421 = vmatprep.subr.bf16.mxu0 %v4832_v31  ;;  %v5959_v30 = vld [vmem:[%s5635_s30 + $0x48] sm:$0xff] }
 0x142   : > { %3462 = vmatprep.subr.bf16.mxu1 %v4835_v32  ;;  %v4916_v31 = vld [vmem:[%s5642_s22 + $0x800] ss:$8 sps:$4 sm:$0xff]   ;;  %v3949_v26 = vcombine.high %v5959_v30, %v5959_v30 }
 0x143   : > { %v4921_v32 = vld [vmem:[%s5642_s22 + $0x900] ss:$8 sps:$4 sm:$0xff]  }
 0x144   : > { %3422 = vmatpush1.bf16.msra.mxu0 %v4830_v33  ;;  %v4926_v33 = vld [vmem:[%s5642_s22 + $0x814] ss:$8 sps:$4 sm:$0xff]  }
 0x145   : > { %3463 = vmatpush1.bf16.msra.mxu1 %v4833_v34  ;;  %3423 = vmatprep.subr.bf16.mxu0 %v4838_v35  ;;  %v4929_v34 = vld [vmem:[%s5642_s22 + $0x914] ss:$8 sps:$4 sm:$0xff]   ;;  %v4924_v35 = vld [vmem:[%s5642_s22 + $0x810] ss:$8 sps:$4 sm:$0xff]  }
 0x146   : > { %3464 = vmatprep.subr.bf16.mxu1 %v4841_v36  ;;  %v4927_v36 = vld [vmem:[%s5642_s22 + $0x910] ss:$8 sps:$4 sm:$0xff]  }
 0x148   : > { %3424 = vmatpush1.bf16.msra.mxu0 %v4836_v37  ;;  %v4932_v37 = vld [vmem:[%s5642_s22 + $0x824] ss:$8 sps:$4 sm:$0xff]  }
 0x149   : > { %3465 = vmatpush1.bf16.msra.mxu1 %v4839_v38  ;;  %3425 = vmatprep.subr.bf16.mxu0 %v4844_v39  ;;  %v4935_v38 = vld [vmem:[%s5642_s22 + $0x924] ss:$8 sps:$4 sm:$0xff]   ;;  %v4930_v39 = vld [vmem:[%s5642_s22 + $0x820] ss:$8 sps:$4 sm:$0xff]  }
 0x14a   : > { %3466 = vmatprep.subr.bf16.mxu1 %v4847_v40  ;;  %v4933_v40 = vld [vmem:[%s5642_s22 + $0x920] ss:$8 sps:$4 sm:$0xff]  }
 0x14c   : > { %3426 = vmatpush1.bf16.msra.mxu0 %v4842_v41  ;;  %v4938_v41 = vld [vmem:[%s5642_s22 + $0x834] ss:$8 sps:$4 sm:$0xff]  }
 0x14d   : > { %3467 = vmatpush1.bf16.msra.mxu1 %v4845_v42  ;;  %3427 = vmatprep.subr.bf16.mxu0 %v4850_v43  ;;  %v4941_v42 = vld [vmem:[%s5642_s22 + $0x934] ss:$8 sps:$4 sm:$0xff]   ;;  %v4936_v43 = vld [vmem:[%s5642_s22 + $0x830] ss:$8 sps:$4 sm:$0xff]  }
 0x14e   : > { %3468 = vmatprep.subr.bf16.mxu1 %v4853_v44  ;;  %v4939_v44 = vld [vmem:[%s5642_s22 + $0x930] ss:$8 sps:$4 sm:$0xff]  }
 0x150   : > { %3428 = vmatpush1.bf16.msra.mxu0 %v4848_v45  ;;  %v4944_v45 = vld [vmem:[%s5642_s22 + $0x844] ss:$8 sps:$4 sm:$0xff]  }
 0x151   : > { %3469 = vmatpush1.bf16.msra.mxu1 %v4851_v46  ;;  %3429 = vmatprep.subr.bf16.mxu0 %v4856_v47  ;;  %v4947_v46 = vld [vmem:[%s5642_s22 + $0x944] ss:$8 sps:$4 sm:$0xff]   ;;  %v4942_v47 = vld [vmem:[%s5642_s22 + $0x840] ss:$8 sps:$4 sm:$0xff]  }
 0x152   : > { %3470 = vmatprep.subr.bf16.mxu1 %v4859_v48  ;;  %v4945_v48 = vld [vmem:[%s5642_s22 + $0x940] ss:$8 sps:$4 sm:$0xff]  }
 0x154   : > { %3430 = vmatpush1.bf16.msra.mxu0 %v4854_v49  ;;  %v4950_v49 = vld [vmem:[%s5642_s22 + $0x854] ss:$8 sps:$4 sm:$0xff]  }
 0x155   : > { %3471 = vmatpush1.bf16.msra.mxu1 %v4857_v50  ;;  %3431 = vmatprep.subr.bf16.mxu0 %v4862_v51  ;;  %v4953_v50 = vld [vmem:[%s5642_s22 + $0x954] ss:$8 sps:$4 sm:$0xff]   ;;  %v4948_v51 = vld [vmem:[%s5642_s22 + $0x850] ss:$8 sps:$4 sm:$0xff]  }
 0x156   : > { %3472 = vmatprep.subr.bf16.mxu1 %v4865_v52  ;;  %v4951_v52 = vld [vmem:[%s5642_s22 + $0x950] ss:$8 sps:$4 sm:$0xff]  }
 0x158   : > { %3432 = vmatpush1.bf16.msra.mxu0 %v4860_v53  ;;  %v4956_v53 = vld [vmem:[%s5642_s22 + $0x864] ss:$8 sps:$4 sm:$0xff]  }
 0x159   : > { %3473 = vmatpush1.bf16.msra.mxu1 %v4863_v54  ;;  %3433 = vmatprep.subr.bf16.mxu0 %v4868_v55  ;;  %v4959_v54 = vld [vmem:[%s5642_s22 + $0x964] ss:$8 sps:$4 sm:$0xff]  }
 0x15a   : > { %3474 = vmatprep.subr.bf16.mxu1 %v4871_v56 }
 0x15c   : > { %3434 = vmatpush1.bf16.msra.mxu0 %v4866_v57  ;;  %v4954_v57 = vld [vmem:[%s5642_s22 + $0x860] ss:$8 sps:$4 sm:$0xff]  }
 0x15d   : > { %3475 = vmatpush1.bf16.msra.mxu1 %v4869_v58  ;;  %3435 = vmatprep.subr.bf16.mxu0 %v4874_v59 }
 0x15e   : > { %3476 = vmatprep.subr.bf16.mxu1 %v4877_v60 }
 0x160   : > { %3436 = vmatpush1.bf16.msra.mxu0 %v4872_v61  ;;  %v4957_v61 = vld [vmem:[%s5642_s22 + $0x960] ss:$8 sps:$4 sm:$0xff]  }
 0x161   : > { %3477 = vmatpush1.bf16.msra.mxu1 %v4875_v62  ;;  %3437 = vmatprep.subr.bf16.mxu0 %v4880_v63 }
 0x162   : > { %3478 = vmatprep.subr.bf16.mxu1 %v4883_v0  ;;  %v4962_v0 = vld [vmem:[%s5642_s22 + $0x874] ss:$8 sps:$4 sm:$0xff]  }
 0x164   : > { %3438 = vmatpush1.bf16.msra.mxu0 %v4878_v1 }
 0x165   : > { %3479 = vmatpush1.bf16.msra.mxu1 %v4881_v2  ;;  %3439 = vmatprep.subr.bf16.mxu0 %v4886_v3  ;;  %v4965_v3 = vld [vmem:[%s5642_s22 + $0x974] ss:$8 sps:$4 sm:$0xff]  }
 0x166   : > { %3480 = vmatprep.subr.bf16.mxu1 %v4889_v4 }
 0x168   : > { %3440 = vmatpush1.bf16.msra.mxu0 %v4884_v5  ;;  %v4960_v5 = vld [vmem:[%s5642_s22 + $0x870] ss:$8 sps:$4 sm:$0xff]  }
 0x169   : > { %3481 = vmatpush1.bf16.msra.mxu1 %v4887_v6  ;;  %3441 = vmatprep.subr.bf16.mxu0 %v4892_v7  ;;  %v4963_v6 = vld [vmem:[%s5642_s22 + $0x970] ss:$8 sps:$4 sm:$0xff]   ;;  %v4968_v7 = vld [vmem:[%s5642_s22 + $0x884] ss:$8 sps:$4 sm:$0xff]  }
 0x16a   : > { %3482 = vmatprep.subr.bf16.mxu1 %v4895_v8  ;;  %v4971_v8 = vld [vmem:[%s5642_s22 + $0x984] ss:$8 sps:$4 sm:$0xff]  }
 0x16c   : > { %3442 = vmatpush1.bf16.msra.mxu0 %v4890_v9  ;;  %v4966_v9 = vld [vmem:[%s5642_s22 + $0x880] ss:$8 sps:$4 sm:$0xff]  }
 0x16d   : > { %3483 = vmatpush1.bf16.msra.mxu1 %v4893_v10  ;;  %3443 = vmatprep.subr.bf16.mxu0 %v4898_v11  ;;  %v4969_v10 = vld [vmem:[%s5642_s22 + $0x980] ss:$8 sps:$4 sm:$0xff]   ;;  %v4974_v11 = vld [vmem:[%s5642_s22 + $0x894] ss:$8 sps:$4 sm:$0xff]  }
 0x16e   : > { %3484 = vmatprep.subr.bf16.mxu1 %v4901_v12  ;;  %v4977_v12 = vld [vmem:[%s5642_s22 + $0x994] ss:$8 sps:$4 sm:$0xff]  }
 0x170   : > { %3444 = vmatpush1.bf16.msra.mxu0 %v4896_v13  ;;  %v4972_v13 = vld [vmem:[%s5642_s22 + $0x890] ss:$8 sps:$4 sm:$0xff]  }
 0x171   : > { %3485 = vmatpush1.bf16.msra.mxu1 %v4899_v14  ;;  %3445 = vmatprep.subr.bf16.mxu0 %v4904_v15  ;;  %v4975_v14 = vld [vmem:[%s5642_s22 + $0x990] ss:$8 sps:$4 sm:$0xff]   ;;  %v4980_v15 = vld [vmem:[%s5642_s22 + $0x8a4] ss:$8 sps:$4 sm:$0xff]  }
 0x172   : > { %3486 = vmatprep.subr.bf16.mxu1 %v4907_v16  ;;  %v4983_v16 = vld [vmem:[%s5642_s22 + $0x9a4] ss:$8 sps:$4 sm:$0xff]  }
 0x174   : > { %3446 = vmatpush1.bf16.msra.mxu0 %v4902_v17  ;;  %v4978_v17 = vld [vmem:[%s5642_s22 + $0x8a0] ss:$8 sps:$4 sm:$0xff]  }
 0x175   : > { %3487 = vmatpush1.bf16.msra.mxu1 %v4905_v18  ;;  %3447 = vmatprep.subr.bf16.mxu0 %v4910_v20  ;;  %v4981_v18 = vld [vmem:[%s5642_s22 + $0x9a0] ss:$8 sps:$4 sm:$0xff]   ;;  %v4986_v20 = vld [vmem:[%s5642_s22 + $0x8b4] ss:$8 sps:$4 sm:$0xff]  }
 0x176   : > { %3488 = vmatprep.subr.bf16.mxu1 %v4913_v22  ;;  %v4989_v22 = vld [vmem:[%s5642_s22 + $0x9b4] ss:$8 sps:$4 sm:$0xff]  }
 0x178   : > { %3448 = vmatpush1.bf16.msra.mxu0 %v4908_v23  ;;  %v4984_v23 = vld [vmem:[%s5642_s22 + $0x8b0] ss:$8 sps:$4 sm:$0xff]  }
 0x179   : > { %3489 = vmatpush1.bf16.msra.mxu1 %v4911_v24  ;;  %3499 = vmatprep.subr.bf16.mxu0 %v4918_v27  ;;  %v4987_v24 = vld [vmem:[%s5642_s22 + $0x9b0] ss:$8 sps:$4 sm:$0xff]   ;;  %v4992_v27 = vld [vmem:[%s5642_s22 + $0x8c4] ss:$8 sps:$4 sm:$0xff]  }
 0x17a   : > { %3540 = vmatprep.subr.bf16.mxu1 %v4923_v28  ;;  %v4995_v28 = vld [vmem:[%s5642_s22 + $0x9c4] ss:$8 sps:$4 sm:$0xff]  }
 0x17b   : > { %3450 = vmatmul.mubr.bf16.vlgmr.msra.gmra.mrb[12].mxu0 %v3942_v21  ;;  %v4990_v21 = vld [vmem:[%s5642_s22 + $0x8c0] ss:$8 sps:$4 sm:$0xff]  }
 0x17c   : > { %3491 = vmatmul.mubr.bf16.vlgmr.msra.gmra.mrb[12].mxu1 %v3944_v29  ;;  %3500 = vmatpush1.bf16.msra.mxu0 %v4916_v31  ;;  %v4993_v29 = vld [vmem:[%s5642_s22 + $0x9c0] ss:$8 sps:$4 sm:$0xff]   ;;  %v4998_v31 = vld [vmem:[%s5642_s22 + $0x8d4] ss:$8 sps:$4 sm:$0xff]  }
 0x17d   : > { %3541 = vmatpush1.bf16.msra.mxu1 %v4921_v32  ;;  %3501 = vmatprep.subr.bf16.mxu0 %v4926_v33  ;;  %v5001_v32 = vld [vmem:[%s5642_s22 + $0x9d4] ss:$8 sps:$4 sm:$0xff]   ;;  %v4996_v33 = vld [vmem:[%s5642_s22 + $0x8d0] ss:$8 sps:$4 sm:$0xff]  }
 0x17e   : > { %3542 = vmatprep.subr.bf16.mxu1 %v4929_v34  ;;  %3531 = vmatprep.mubr.bf16.mxu0 %v3947_v25  ;;  %v4999_v34 = vld [vmem:[%s5642_s22 + $0x9d0] ss:$8 sps:$4 sm:$0xff]   ;;  %v5004_v25 = vld [vmem:[%s5642_s22 + $0x8e4] ss:$8 sps:$4 sm:$0xff]  }
 0x17f   : > { %3572 = vmatprep.mubr.bf16.mxu1 %v3949_v26  ;;  %v5007_v26 = vld [vmem:[%s5642_s22 + $0x9e4] ss:$8 sps:$4 sm:$0xff]  }
 0x180   : > { %3502 = vmatpush1.bf16.msra.mxu0 %v4924_v35  ;;  %v5002_v35 = vld [vmem:[%s5642_s22 + $0x8e0] ss:$8 sps:$4 sm:$0xff]  }
 0x181   : > { %3543 = vmatpush1.bf16.msra.mxu1 %v4927_v36  ;;  %3503 = vmatprep.subr.bf16.mxu0 %v4932_v37  ;;  %v5005_v36 = vld [vmem:[%s5642_s22 + $0x9e0] ss:$8 sps:$4 sm:$0xff]   ;;  %v5010_v37 = vld [vmem:[%s5642_s22 + $0x8f4] ss:$8 sps:$4 sm:$0xff]  }
 0x182   : > { %3544 = vmatprep.subr.bf16.mxu1 %v4935_v38  ;;  %v5013_v38 = vld [vmem:[%s5642_s22 + $0x9f4] ss:$8 sps:$4 sm:$0xff]  }
 0x184   : > { %3504 = vmatpush1.bf16.msra.mxu0 %v4930_v39  ;;  %v5008_v39 = vld [vmem:[%s5642_s22 + $0x8f0] ss:$8 sps:$4 sm:$0xff]  }
 0x185   : > { %3545 = vmatpush1.bf16.msra.mxu1 %v4933_v40  ;;  %3505 = vmatprep.subr.bf16.mxu0 %v4938_v41  ;;  %v5011_v40 = vld [vmem:[%s5642_s22 + $0x9f0] ss:$8 sps:$4 sm:$0xff]   ;;  %v5018_v41 = vld [vmem:[%s5642_s22 + $0xa04] ss:$8 sps:$4 sm:$0xff]  }
 0x186   : > { %3546 = vmatprep.subr.bf16.mxu1 %v4941_v42  ;;  %v5023_v42 = vld [vmem:[%s5642_s22 + $0xb04] ss:$8 sps:$4 sm:$0xff]  }
 0x188   : > { %3506 = vmatpush1.bf16.msra.mxu0 %v4936_v43  ;;  %v3946_v43 = vcombine.low %v5952_v19, %v5952_v19 }
 0x189   : > { %3547 = vmatpush1.bf16.msra.mxu1 %v4939_v44  ;;  %3507 = vmatprep.subr.bf16.mxu0 %v4944_v45  ;;  %v3948_v44 = vcombine.low %v5959_v30, %v5959_v30  ;;  %v6038_v45 = vld [vmem:[%s5635_s30 + $0x50] sm:$0xff] }
 0x18a   : > { %3548 = vmatprep.subr.bf16.mxu1 %v4947_v46  ;;  %v6041_v46 = vld [vmem:[%s5635_s30 + $0x58] sm:$0xff]  ;;  %v3951_v19 = vcombine.high %v6038_v45, %v6038_v45 }
 0x18b   : > { %v3953_v30 = vcombine.high %v6041_v46, %v6041_v46 }
 0x18c   : > { %3508 = vmatpush1.bf16.msra.mxu0 %v4942_v47  ;;  %v5016_v47 = vld [vmem:[%s5642_s22 + $0xa00] ss:$8 sps:$4 sm:$0xff]  }
 0x18d   : > { %3549 = vmatpush1.bf16.msra.mxu1 %v4945_v48  ;;  %3509 = vmatprep.subr.bf16.mxu0 %v4950_v49  ;;  %v5021_v48 = vld [vmem:[%s5642_s22 + $0xb00] ss:$8 sps:$4 sm:$0xff]   ;;  %v5026_v49 = vld [vmem:[%s5642_s22 + $0xa14] ss:$8 sps:$4 sm:$0xff]  }
 0x18e   : > { %3550 = vmatprep.subr.bf16.mxu1 %v4953_v50  ;;  %v3205_v55 = vpop.f32.mrb[0].mxu0  ;;  %v5029_v50 = vld [vmem:[%s5642_s22 + $0xb14] ss:$8 sps:$4 sm:$0xff]  }
 0x18f   : > { %v3246_v56 = vpop.f32.mrb[0].mxu1  ;;  %v3207_v59 = vpop.f32.mrb[1].mxu0 }
 0x190   : > { %v5990_v58 = vadd.f32 %v3246_v56, %v3205_v55  ;;  %v3248_v60 = vpop.f32.mrb[1].mxu1  ;;  %v3209_v63 = vpop.f32.mrb[2].mxu0  ;;  %3510 = vmatpush1.bf16.msra.mxu0 %v4948_v51  ;;  %v5024_v51 = vld [vmem:[%s5642_s22 + $0xa10] ss:$8 sps:$4 sm:$0xff]   ;;  %v5030_v55 = vld [vmem:[%s5642_s22 + $0xa20] ss:$8 sps:$4 sm:$0xff]  }
 0x191   : > { %v5993_v62 = vadd.f32 %v3248_v60, %v3207_v59  ;;  %3551 = vmatpush1.bf16.msra.mxu1 %v4951_v52  ;;  %v3250_v1 = vpop.f32.mrb[2].mxu1  ;;  %v3210_v2 = vpop.f32.mrb[3].mxu0  ;;  %3511 = vmatprep.subr.bf16.mxu0 %v4956_v53  ;;  %v5027_v52 = vld [vmem:[%s5642_s22 + $0xb10] ss:$8 sps:$4 sm:$0xff]   ;;  %v5032_v53 = vld [vmem:[%s5642_s22 + $0xa24] ss:$8 sps:$4 sm:$0xff]  }
 0x192   : > { %3552 = vmatprep.subr.bf16.mxu1 %v4959_v54  ;;  %v3251_v4 = vpop.f32.mrb[3].mxu1  ;;  %v5035_v54 = vld [vmem:[%s5642_s22 + $0xb24] ss:$8 sps:$4 sm:$0xff]   ;;  %v5033_v56 = vld [vmem:[%s5642_s22 + $0xb20] ss:$8 sps:$4 sm:$0xff]  }
 0x193   : > { %v5041_v59 = vld [vmem:[%s5642_s22 + $0xb34] ss:$8 sps:$4 sm:$0xff]   ;;  %v5036_v60 = vld [vmem:[%s5642_s22 + $0xa30] ss:$8 sps:$4 sm:$0xff]   ;;  %v5044_v63 = vld [vmem:[%s5642_s22 + $0xa44] ss:$8 sps:$4 sm:$0xff]  }
 0x194   : > { %3512 = vmatpush1.bf16.msra.mxu0 %v4954_v57  ;;  %v5038_v57 = vld [vmem:[%s5642_s22 + $0xa34] ss:$8 sps:$4 sm:$0xff]   ;;  %v5042_v1 = vld [vmem:[%s5642_s22 + $0xa40] ss:$8 sps:$4 sm:$0xff]  }
 0x195   : > { %3553 = vmatpush1.bf16.msra.mxu1 %v4957_v61  ;;  %3513 = vmatprep.subr.bf16.mxu0 %v4962_v0  ;;  %v5039_v61 = vld [vmem:[%s5642_s22 + $0xb30] ss:$8 sps:$4 sm:$0xff]   ;;  %v5047_v0 = vld [vmem:[%s5642_s22 + $0xb44] ss:$8 sps:$4 sm:$0xff]   ;;  %v5045_v2 = vld [vmem:[%s5642_s22 + $0xb40] ss:$8 sps:$4 sm:$0xff]  }
 0x196   : > { %3554 = vmatprep.subr.bf16.mxu1 %v4965_v3  ;;  %v5050_v3 = vld [vmem:[%s5642_s22 + $0xa54] ss:$8 sps:$4 sm:$0xff]  }
 0x197   : > { %v5053_v4 = vld [vmem:[%s5642_s22 + $0xb54] ss:$8 sps:$4 sm:$0xff]  }
 0x198   : > { %3514 = vmatpush1.bf16.msra.mxu0 %v4960_v5  ;;  %v5048_v5 = vld [vmem:[%s5642_s22 + $0xa50] ss:$8 sps:$4 sm:$0xff]  }
 0x199   : > { %3555 = vmatpush1.bf16.msra.mxu1 %v4963_v6  ;;  %3515 = vmatprep.subr.bf16.mxu0 %v4968_v7  ;;  %v5051_v6 = vld [vmem:[%s5642_s22 + $0xb50] ss:$8 sps:$4 sm:$0xff]   ;;  %v5056_v7 = vld [vmem:[%s5642_s22 + $0xa64] ss:$8 sps:$4 sm:$0xff]  }
 0x19a   : > { %3556 = vmatprep.subr.bf16.mxu1 %v4971_v8  ;;  %v5059_v8 = vld [vmem:[%s5642_s22 + $0xb64] ss:$8 sps:$4 sm:$0xff]  }
 0x19c   : > { %3516 = vmatpush1.bf16.msra.mxu0 %v4966_v9 }
 0x19d   : > { %3557 = vmatpush1.bf16.msra.mxu1 %v4969_v10  ;;  %3517 = vmatprep.subr.bf16.mxu0 %v4974_v11 }
 0x19e   : > { %3558 = vmatprep.subr.bf16.mxu1 %v4977_v12 }
 0x1a0   : > { %3518 = vmatpush1.bf16.msra.mxu0 %v4972_v13 }
 0x1a1   : > { %3559 = vmatpush1.bf16.msra.mxu1 %v4975_v14  ;;  %3519 = vmatprep.subr.bf16.mxu0 %v4980_v15 }
 0x1a2   : > { %3560 = vmatprep.subr.bf16.mxu1 %v4983_v16  ;;  %v5054_v16 = vld [vmem:[%s5642_s22 + $0xa60] ss:$8 sps:$4 sm:$0xff]  }
 0x1a4   : > { %3520 = vmatpush1.bf16.msra.mxu0 %v4978_v17  ;;  %v5057_v17 = vld [vmem:[%s5642_s22 + $0xb60] ss:$8 sps:$4 sm:$0xff]  }
 0x1a5   : > { %3561 = vmatpush1.bf16.msra.mxu1 %v4981_v18  ;;  %3521 = vmatprep.subr.bf16.mxu0 %v4986_v20 }
 0x1a6   : > { %3562 = vmatprep.subr.bf16.mxu1 %v4989_v22 }
 0x1a8   : > { %3522 = vmatpush1.bf16.msra.mxu0 %v4984_v23  ;;  %v5065_v23 = vld [vmem:[%s5642_s22 + $0xb74] ss:$8 sps:$4 sm:$0xff]  }
 0x1a9   : > { %3563 = vmatpush1.bf16.msra.mxu1 %v4987_v24  ;;  %3523 = vmatprep.subr.bf16.mxu0 %v4992_v27  ;;  %v5060_v27 = vld [vmem:[%s5642_s22 + $0xa70] ss:$8 sps:$4 sm:$0xff]  }
 0x1aa   : > { %3564 = vmatprep.subr.bf16.mxu1 %v4995_v28  ;;  %v5063_v28 = vld [vmem:[%s5642_s22 + $0xb70] ss:$8 sps:$4 sm:$0xff]  }
 0x1ac   : > { %3524 = vmatpush1.bf16.msra.mxu0 %v4990_v21  ;;  %v5068_v21 = vld [vmem:[%s5642_s22 + $0xa84] ss:$8 sps:$4 sm:$0xff]  }
 0x1ad   : > { %3565 = vmatpush1.bf16.msra.mxu1 %v4993_v29  ;;  %3525 = vmatprep.subr.bf16.mxu0 %v4998_v31  ;;  %v5071_v29 = vld [vmem:[%s5642_s22 + $0xb84] ss:$8 sps:$4 sm:$0xff]   ;;  %v5066_v31 = vld [vmem:[%s5642_s22 + $0xa80] ss:$8 sps:$4 sm:$0xff]  }
 0x1ae   : > { %3566 = vmatprep.subr.bf16.mxu1 %v5001_v32  ;;  %v5069_v32 = vld [vmem:[%s5642_s22 + $0xb80] ss:$8 sps:$4 sm:$0xff]  }
 0x1b0   : > { %3526 = vmatpush1.bf16.msra.mxu0 %v4996_v33  ;;  %v5074_v33 = vld [vmem:[%s5642_s22 + $0xa94] ss:$8 sps:$4 sm:$0xff]  }
 0x1b1   : > { %3567 = vmatpush1.bf16.msra.mxu1 %v4999_v34  ;;  %3527 = vmatprep.subr.bf16.mxu0 %v5004_v25  ;;  %v5077_v34 = vld [vmem:[%s5642_s22 + $0xb94] ss:$8 sps:$4 sm:$0xff]   ;;  %v5072_v25 = vld [vmem:[%s5642_s22 + $0xa90] ss:$8 sps:$4 sm:$0xff]  }
 0x1b2   : > { %3568 = vmatprep.subr.bf16.mxu1 %v5007_v26  ;;  %v5075_v26 = vld [vmem:[%s5642_s22 + $0xb90] ss:$8 sps:$4 sm:$0xff]  }
 0x1b4   : > { %3528 = vmatpush1.bf16.msra.mxu0 %v5002_v35  ;;  %v5080_v35 = vld [vmem:[%s5642_s22 + $0xaa4] ss:$8 sps:$4 sm:$0xff]  }
 0x1b5   : > { %3569 = vmatpush1.bf16.msra.mxu1 %v5005_v36  ;;  %3529 = vmatprep.subr.bf16.mxu0 %v5010_v37  ;;  %v5083_v36 = vld [vmem:[%s5642_s22 + $0xba4] ss:$8 sps:$4 sm:$0xff]   ;;  %v5078_v37 = vld [vmem:[%s5642_s22 + $0xaa0] ss:$8 sps:$4 sm:$0xff]  }
 0x1b6   : > { %3570 = vmatprep.subr.bf16.mxu1 %v5013_v38  ;;  %v5081_v38 = vld [vmem:[%s5642_s22 + $0xba0] ss:$8 sps:$4 sm:$0xff]  }
 0x1b8   : > { %3530 = vmatpush1.bf16.msra.mxu0 %v5008_v39  ;;  %v5086_v39 = vld [vmem:[%s5642_s22 + $0xab4] ss:$8 sps:$4 sm:$0xff]  }
 0x1b9   : > { %3571 = vmatpush1.bf16.msra.mxu1 %v5011_v40  ;;  %3581 = vmatprep.subr.bf16.mxu0 %v5018_v41  ;;  %v5089_v40 = vld [vmem:[%s5642_s22 + $0xbb4] ss:$8 sps:$4 sm:$0xff]   ;;  %v5084_v41 = vld [vmem:[%s5642_s22 + $0xab0] ss:$8 sps:$4 sm:$0xff]  }
 0x1ba   : > { %3622 = vmatprep.subr.bf16.mxu1 %v5023_v42  ;;  %v5087_v42 = vld [vmem:[%s5642_s22 + $0xbb0] ss:$8 sps:$4 sm:$0xff]  }
 0x1bb   : > { %3532 = vmatmul.mubr.bf16.vlgmr.msra.gmra.mrb[16].mxu0 %v3946_v43  ;;  %v5092_v43 = vld [vmem:[%s5642_s22 + $0xac4] ss:$8 sps:$4 sm:$0xff]  }
 0x1bc   : > { %3573 = vmatmul.mubr.bf16.vlgmr.msra.gmra.mrb[16].mxu1 %v3948_v44  ;;  %3582 = vmatpush1.bf16.msra.mxu0 %v5016_v47  ;;  %v5095_v44 = vld [vmem:[%s5642_s22 + $0xbc4] ss:$8 sps:$4 sm:$0xff]   ;;  %v5090_v47 = vld [vmem:[%s5642_s22 + $0xac0] ss:$8 sps:$4 sm:$0xff]  }
 0x1bd   : > { %3623 = vmatpush1.bf16.msra.mxu1 %v5021_v48  ;;  %3583 = vmatprep.subr.bf16.mxu0 %v5026_v49  ;;  %v5093_v48 = vld [vmem:[%s5642_s22 + $0xbc0] ss:$8 sps:$4 sm:$0xff]   ;;  %v5098_v49 = vld [vmem:[%s5642_s22 + $0xad4] ss:$8 sps:$4 sm:$0xff]  }
 0x1be   : > { %3624 = vmatprep.subr.bf16.mxu1 %v5029_v50  ;;  %3613 = vmatprep.mubr.bf16.mxu0 %v3951_v19  ;;  %v5101_v50 = vld [vmem:[%s5642_s22 + $0xbd4] ss:$8 sps:$4 sm:$0xff]   ;;  %v5096_v19 = vld [vmem:[%s5642_s22 + $0xad0] ss:$8 sps:$4 sm:$0xff]  }
 0x1bf   : > { %3654 = vmatprep.mubr.bf16.mxu1 %v3953_v30  ;;  %v5099_v30 = vld [vmem:[%s5642_s22 + $0xbd0] ss:$8 sps:$4 sm:$0xff]  }
 0x1c0   : > { %3584 = vmatpush1.bf16.msra.mxu0 %v5024_v51  ;;  %v5104_v51 = vld [vmem:[%s5642_s22 + $0xae4] ss:$8 sps:$4 sm:$0xff]  }
 0x1c1   : > { %3625 = vmatpush1.bf16.msra.mxu1 %v5027_v52  ;;  %3585 = vmatprep.subr.bf16.mxu0 %v5032_v53  ;;  %v5107_v52 = vld [vmem:[%s5642_s22 + $0xbe4] ss:$8 sps:$4 sm:$0xff]   ;;  %v5102_v53 = vld [vmem:[%s5642_s22 + $0xae0] ss:$8 sps:$4 sm:$0xff]  }
 0x1c2   : > { %3626 = vmatprep.subr.bf16.mxu1 %v5035_v54  ;;  %v5105_v54 = vld [vmem:[%s5642_s22 + $0xbe0] ss:$8 sps:$4 sm:$0xff]  }
 0x1c4   : > { %3586 = vmatpush1.bf16.msra.mxu0 %v5030_v55  ;;  %v5110_v55 = vld [vmem:[%s5642_s22 + $0xaf4] ss:$8 sps:$4 sm:$0xff]  }
 0x1c5   : > { %3627 = vmatpush1.bf16.msra.mxu1 %v5033_v56  ;;  %3587 = vmatprep.subr.bf16.mxu0 %v5038_v57  ;;  %v5113_v56 = vld [vmem:[%s5642_s22 + $0xbf4] ss:$8 sps:$4 sm:$0xff]   ;;  %v5108_v57 = vld [vmem:[%s5642_s22 + $0xaf0] ss:$8 sps:$4 sm:$0xff]  }
 0x1c6   : > { %3628 = vmatprep.subr.bf16.mxu1 %v5041_v59  ;;  %v5111_v59 = vld [vmem:[%s5642_s22 + $0xbf0] ss:$8 sps:$4 sm:$0xff]  }
 0x1c8   : > { %3588 = vmatpush1.bf16.msra.mxu0 %v5036_v60  ;;  %v5118_v60 = vld [vmem:[%s5642_s22 + $0xc04] ss:$8 sps:$4 sm:$0xff]  }
 0x1c9   : > { %3629 = vmatpush1.bf16.msra.mxu1 %v5039_v61  ;;  %3589 = vmatprep.subr.bf16.mxu0 %v5044_v63  ;;  %v5123_v61 = vld [vmem:[%s5642_s22 + $0xd04] ss:$8 sps:$4 sm:$0xff]   ;;  %v3950_v63 = vcombine.low %v6038_v45, %v6038_v45 }
 0x1ca   : > { %3630 = vmatprep.subr.bf16.mxu1 %v5047_v0  ;;  %v3952_v0 = vcombine.low %v6041_v46, %v6041_v46 }
 0x1cc   : > { %3590 = vmatpush1.bf16.msra.mxu0 %v5042_v1  ;;  %v6122_v1 = vld [vmem:[%s5635_s30 + $0x60] sm:$0xff] }
 0x1cd   : > { %3631 = vmatpush1.bf16.msra.mxu1 %v5045_v2  ;;  %3591 = vmatprep.subr.bf16.mxu0 %v5050_v3  ;;  %v6125_v2 = vld [vmem:[%s5635_s30 + $0x68] sm:$0xff]  ;;  %v3955_v45 = vcombine.high %v6122_v1, %v6122_v1 }
 0x1ce   : > { %3632 = vmatprep.subr.bf16.mxu1 %v5053_v4  ;;  %v3287_v9 = vpop.f32.mrb[4].mxu0  ;;  %v5116_v3 = vld [vmem:[%s5642_s22 + $0xc00] ss:$8 sps:$4 sm:$0xff]   ;;  %v3957_v46 = vcombine.high %v6125_v2, %v6125_v2 }
 0x1cf   : > { %v3328_v10 = vpop.f32.mrb[4].mxu1  ;;  %v3288_v11 = vadd.f32 %v3287_v9, %v5990_v58  ;;  %v3289_v12 = vpop.f32.mrb[5].mxu0  ;;  %v5062_v58 = vld [vmem:[%s5642_s22 + $0xa74] ss:$8 sps:$4 sm:$0xff]   ;;  %v5121_v4 = vld [vmem:[%s5642_s22 + $0xd00] ss:$8 sps:$4 sm:$0xff]  }
 0x1d0   : > { %v3330_v13 = vpop.f32.mrb[5].mxu1  ;;  %v3290_v14 = vadd.f32 %v3289_v12, %v5993_v62  ;;  %v3291_v15 = vpop.f32.mrb[6].mxu0  ;;  %3592 = vmatpush1.bf16.msra.mxu0 %v5048_v5  ;;  %v5126_v5 = vld [vmem:[%s5642_s22 + $0xc14] ss:$8 sps:$4 sm:$0xff]   ;;  %v5132_v9 = vld [vmem:[%s5642_s22 + $0xc24] ss:$8 sps:$4 sm:$0xff]  }
 0x1d1   : > { %3633 = vmatpush1.bf16.msra.mxu1 %v5051_v6  ;;  %v3332_v18 = vpop.f32.mrb[6].mxu1  ;;  %v6075_v20 = vadd.f32 %v3328_v10, %v3288_v11  ;;  %v3292_v22 = vpop.f32.mrb[7].mxu0  ;;  %3593 = vmatprep.subr.bf16.mxu0 %v5056_v7  ;;  %v5129_v6 = vld [vmem:[%s5642_s22 + $0xd14] ss:$8 sps:$4 sm:$0xff]   ;;  %v5124_v7 = vld [vmem:[%s5642_s22 + $0xc10] ss:$8 sps:$4 sm:$0xff]  }
 0x1d2   : > { %3634 = vmatprep.subr.bf16.mxu1 %v5059_v8  ;;  %v3333_v62 = vpop.f32.mrb[7].mxu1  ;;  %v6079_v24 = vadd.f32 %v3330_v13, %v3290_v14  ;;  %v5127_v8 = vld [vmem:[%s5642_s22 + $0xd10] ss:$8 sps:$4 sm:$0xff]   ;;  %v5135_v10 = vld [vmem:[%s5642_s22 + $0xd24] ss:$8 sps:$4 sm:$0xff]  }
 0x1d3   : > { %v5130_v11 = vld [vmem:[%s5642_s22 + $0xc20] ss:$8 sps:$4 sm:$0xff]   ;;  %v5138_v13 = vld [vmem:[%s5642_s22 + $0xc34] ss:$8 sps:$4 sm:$0xff]   ;;  %v5136_v15 = vld [vmem:[%s5642_s22 + $0xc30] ss:$8 sps:$4 sm:$0xff]  }
 0x1d4   : > { %3594 = vmatpush1.bf16.msra.mxu0 %v5054_v16  ;;  %v5133_v12 = vld [vmem:[%s5642_s22 + $0xd20] ss:$8 sps:$4 sm:$0xff]   ;;  %v5141_v14 = vld [vmem:[%s5642_s22 + $0xd34] ss:$8 sps:$4 sm:$0xff]   ;;  %v5139_v16 = vld [vmem:[%s5642_s22 + $0xd30] ss:$8 sps:$4 sm:$0xff]  }
 0x1d5   : > { %3635 = vmatpush1.bf16.msra.mxu1 %v5057_v17  ;;  %3595 = vmatprep.subr.bf16.mxu0 %v5062_v58  ;;  %v5144_v17 = vld [vmem:[%s5642_s22 + $0xc44] ss:$8 sps:$4 sm:$0xff]   ;;  %v5142_v22 = vld [vmem:[%s5642_s22 + $0xc40] ss:$8 sps:$4 sm:$0xff]   ;;  %v5153_v62 = vld [vmem:[%s5642_s22 + $0xd54] ss:$8 sps:$4 sm:$0xff]  }
 0x1d6   : > { %3636 = vmatprep.subr.bf16.mxu1 %v5065_v23  ;;  %v5147_v18 = vld [vmem:[%s5642_s22 + $0xd44] ss:$8 sps:$4 sm:$0xff]   ;;  %v5145_v58 = vld [vmem:[%s5642_s22 + $0xd40] ss:$8 sps:$4 sm:$0xff]   ;;  %v5150_v23 = vld [vmem:[%s5642_s22 + $0xc54] ss:$8 sps:$4 sm:$0xff]  }
 0x1d8   : > { %3596 = vmatpush1.bf16.msra.mxu0 %v5060_v27  ;;  %v5148_v27 = vld [vmem:[%s5642_s22 + $0xc50] ss:$8 sps:$4 sm:$0xff]  }
 0x1d9   : > { %3637 = vmatpush1.bf16.msra.mxu1 %v5063_v28  ;;  %3597 = vmatprep.subr.bf16.mxu0 %v5068_v21  ;;  %v5151_v28 = vld [vmem:[%s5642_s22 + $0xd50] ss:$8 sps:$4 sm:$0xff]   ;;  %v5156_v21 = vld [vmem:[%s5642_s22 + $0xc64] ss:$8 sps:$4 sm:$0xff]  }
 0x1da   : > { %3638 = vmatprep.subr.bf16.mxu1 %v5071_v29  ;;  %v5159_v29 = vld [vmem:[%s5642_s22 + $0xd64] ss:$8 sps:$4 sm:$0xff]  }
 0x1dc   : > { %3598 = vmatpush1.bf16.msra.mxu0 %v5066_v31 }
 0x1dd   : > { %3639 = vmatpush1.bf16.msra.mxu1 %v5069_v32  ;;  %3599 = vmatprep.subr.bf16.mxu0 %v5074_v33 }
 0x1de   : > { %3640 = vmatprep.subr.bf16.mxu1 %v5077_v34 }
 0x1e0   : > { %3600 = vmatpush1.bf16.msra.mxu0 %v5072_v25 }
 0x1e1   : > { %3641 = vmatpush1.bf16.msra.mxu1 %v5075_v26  ;;  %3601 = vmatprep.subr.bf16.mxu0 %v5080_v35 }
 0x1e2   : > { %3642 = vmatprep.subr.bf16.mxu1 %v5083_v36  ;;  %v5154_v36 = vld [vmem:[%s5642_s22 + $0xc60] ss:$8 sps:$4 sm:$0xff]  }
 0x1e4   : > { %3602 = vmatpush1.bf16.msra.mxu0 %v5078_v37  ;;  %v5157_v37 = vld [vmem:[%s5642_s22 + $0xd60] ss:$8 sps:$4 sm:$0xff]  }
 0x1e5   : > { %3643 = vmatpush1.bf16.msra.mxu1 %v5081_v38  ;;  %3603 = vmatprep.subr.bf16.mxu0 %v5086_v39 }
 0x1e6   : > { %3644 = vmatprep.subr.bf16.mxu1 %v5089_v40 }
 0x1e8   : > { %3604 = vmatpush1.bf16.msra.mxu0 %v5084_v41  ;;  %v5165_v41 = vld [vmem:[%s5642_s22 + $0xd74] ss:$8 sps:$4 sm:$0xff]  }
 0x1e9   : > { %3645 = vmatpush1.bf16.msra.mxu1 %v5087_v42  ;;  %3605 = vmatprep.subr.bf16.mxu0 %v5092_v43  ;;  %v5160_v43 = vld [vmem:[%s5642_s22 + $0xc70] ss:$8 sps:$4 sm:$0xff]  }
 0x1ea   : > { %3646 = vmatprep.subr.bf16.mxu1 %v5095_v44  ;;  %v5163_v44 = vld [vmem:[%s5642_s22 + $0xd70] ss:$8 sps:$4 sm:$0xff]  }
 0x1ec   : > { %3606 = vmatpush1.bf16.msra.mxu0 %v5090_v47  ;;  %v5168_v47 = vld [vmem:[%s5642_s22 + $0xc84] ss:$8 sps:$4 sm:$0xff]  }
 0x1ed   : > { %3647 = vmatpush1.bf16.msra.mxu1 %v5093_v48  ;;  %3607 = vmatprep.subr.bf16.mxu0 %v5098_v49  ;;  %v5171_v48 = vld [vmem:[%s5642_s22 + $0xd84] ss:$8 sps:$4 sm:$0xff]   ;;  %v5166_v49 = vld [vmem:[%s5642_s22 + $0xc80] ss:$8 sps:$4 sm:$0xff]  }
 0x1ee   : > { %3648 = vmatprep.subr.bf16.mxu1 %v5101_v50  ;;  %v5169_v50 = vld [vmem:[%s5642_s22 + $0xd80] ss:$8 sps:$4 sm:$0xff]  }
 0x1f0   : > { %3608 = vmatpush1.bf16.msra.mxu0 %v5096_v19  ;;  %v5174_v19 = vld [vmem:[%s5642_s22 + $0xc94] ss:$8 sps:$4 sm:$0xff]  }
 0x1f1   : > { %3649 = vmatpush1.bf16.msra.mxu1 %v5099_v30  ;;  %3609 = vmatprep.subr.bf16.mxu0 %v5104_v51  ;;  %v5177_v30 = vld [vmem:[%s5642_s22 + $0xd94] ss:$8 sps:$4 sm:$0xff]   ;;  %v5172_v51 = vld [vmem:[%s5642_s22 + $0xc90] ss:$8 sps:$4 sm:$0xff]  }
 0x1f2   : > { %3650 = vmatprep.subr.bf16.mxu1 %v5107_v52  ;;  %v5175_v52 = vld [vmem:[%s5642_s22 + $0xd90] ss:$8 sps:$4 sm:$0xff]  }
 0x1f4   : > { %3610 = vmatpush1.bf16.msra.mxu0 %v5102_v53  ;;  %v5180_v53 = vld [vmem:[%s5642_s22 + $0xca4] ss:$8 sps:$4 sm:$0xff]  }
 0x1f5   : > { %3651 = vmatpush1.bf16.msra.mxu1 %v5105_v54  ;;  %3611 = vmatprep.subr.bf16.mxu0 %v5110_v55  ;;  %v5183_v54 = vld [vmem:[%s5642_s22 + $0xda4] ss:$8 sps:$4 sm:$0xff]   ;;  %v5178_v55 = vld [vmem:[%s5642_s22 + $0xca0] ss:$8 sps:$4 sm:$0xff]  }
 0x1f6   : > { %3652 = vmatprep.subr.bf16.mxu1 %v5113_v56  ;;  %v5181_v56 = vld [vmem:[%s5642_s22 + $0xda0] ss:$8 sps:$4 sm:$0xff]  }
 0x1f8   : > { %3612 = vmatpush1.bf16.msra.mxu0 %v5108_v57  ;;  %v5186_v57 = vld [vmem:[%s5642_s22 + $0xcb4] ss:$8 sps:$4 sm:$0xff]  }
 0x1f9   : > { %3653 = vmatpush1.bf16.msra.mxu1 %v5111_v59  ;;  %3663 = vmatprep.subr.bf16.mxu0 %v5118_v60  ;;  %v5189_v59 = vld [vmem:[%s5642_s22 + $0xdb4] ss:$8 sps:$4 sm:$0xff]   ;;  %v5184_v60 = vld [vmem:[%s5642_s22 + $0xcb0] ss:$8 sps:$4 sm:$0xff]  }
 0x1fa   : > { %3704 = vmatprep.subr.bf16.mxu1 %v5123_v61  ;;  %v5187_v61 = vld [vmem:[%s5642_s22 + $0xdb0] ss:$8 sps:$4 sm:$0xff]  }
 0x1fb   : > { %3614 = vmatmul.mubr.bf16.vlgmr.msra.gmra.mrb[20].mxu0 %v3950_v63  ;;  %v5192_v63 = vld [vmem:[%s5642_s22 + $0xcc4] ss:$8 sps:$4 sm:$0xff]  }
 0x1fc   : > { %3655 = vmatmul.mubr.bf16.vlgmr.msra.gmra.mrb[20].mxu1 %v3952_v0  ;;  %3664 = vmatpush1.bf16.msra.mxu0 %v5116_v3  ;;  %v5195_v0 = vld [vmem:[%s5642_s22 + $0xdc4] ss:$8 sps:$4 sm:$0xff]   ;;  %v5190_v3 = vld [vmem:[%s5642_s22 + $0xcc0] ss:$8 sps:$4 sm:$0xff]  }
 0x1fd   : > { %3705 = vmatpush1.bf16.msra.mxu1 %v5121_v4  ;;  %3665 = vmatprep.subr.bf16.mxu0 %v5126_v5  ;;  %v5193_v4 = vld [vmem:[%s5642_s22 + $0xdc0] ss:$8 sps:$4 sm:$0xff]   ;;  %v5198_v5 = vld [vmem:[%s5642_s22 + $0xcd4] ss:$8 sps:$4 sm:$0xff]  }
 0x1fe   : > { %3706 = vmatprep.subr.bf16.mxu1 %v5129_v6  ;;  %3695 = vmatprep.mubr.bf16.mxu0 %v3955_v45  ;;  %v5201_v6 = vld [vmem:[%s5642_s22 + $0xdd4] ss:$8 sps:$4 sm:$0xff]   ;;  %v5196_v45 = vld [vmem:[%s5642_s22 + $0xcd0] ss:$8 sps:$4 sm:$0xff]  }
 0x1ff   : > { %3736 = vmatprep.mubr.bf16.mxu1 %v3957_v46  ;;  %v5199_v46 = vld [vmem:[%s5642_s22 + $0xdd0] ss:$8 sps:$4 sm:$0xff]  }
 0x200   : > { %3666 = vmatpush1.bf16.msra.mxu0 %v5124_v7  ;;  %v5204_v7 = vld [vmem:[%s5642_s22 + $0xce4] ss:$8 sps:$4 sm:$0xff]  }
 0x201   : > { %3707 = vmatpush1.bf16.msra.mxu1 %v5127_v8  ;;  %3667 = vmatprep.subr.bf16.mxu0 %v5132_v9  ;;  %v5207_v8 = vld [vmem:[%s5642_s22 + $0xde4] ss:$8 sps:$4 sm:$0xff]   ;;  %v5202_v9 = vld [vmem:[%s5642_s22 + $0xce0] ss:$8 sps:$4 sm:$0xff]  }
 0x202   : > { %3708 = vmatprep.subr.bf16.mxu1 %v5135_v10  ;;  %v5205_v10 = vld [vmem:[%s5642_s22 + $0xde0] ss:$8 sps:$4 sm:$0xff]  }
 0x204   : > { %3668 = vmatpush1.bf16.msra.mxu0 %v5130_v11  ;;  %v5210_v11 = vld [vmem:[%s5642_s22 + $0xcf4] ss:$8 sps:$4 sm:$0xff]  }
 0x205   : > { %3709 = vmatpush1.bf16.msra.mxu1 %v5133_v12  ;;  %3669 = vmatprep.subr.bf16.mxu0 %v5138_v13  ;;  %v5213_v12 = vld [vmem:[%s5642_s22 + $0xdf4] ss:$8 sps:$4 sm:$0xff]   ;;  %v5208_v13 = vld [vmem:[%s5642_s22 + $0xcf0] ss:$8 sps:$4 sm:$0xff]  }
 0x206   : > { %3710 = vmatprep.subr.bf16.mxu1 %v5141_v14  ;;  %v5211_v14 = vld [vmem:[%s5642_s22 + $0xdf0] ss:$8 sps:$4 sm:$0xff]  }
 0x208   : > { %3670 = vmatpush1.bf16.msra.mxu0 %v5136_v15  ;;  %v5218_v15 = vld [vmem:[%s5642_s22 + $0xe04] ss:$8 sps:$4 sm:$0xff]  }
 0x209   : > { %3711 = vmatpush1.bf16.msra.mxu1 %v5139_v16  ;;  %3671 = vmatprep.subr.bf16.mxu0 %v5144_v17  ;;  %v3954_v16 = vcombine.low %v6122_v1, %v6122_v1  ;;  %v3956_v17 = vcombine.low %v6125_v2, %v6125_v2  ;;  %v5226_v1 = vld [vmem:[%s5642_s22 + $0xe24] ss:$8 sps:$4 sm:$0xff]   ;;  %v5224_v2 = vld [vmem:[%s5642_s22 + $0xe20] ss:$8 sps:$4 sm:$0xff]  }
 0x20a   : > { %3712 = vmatprep.subr.bf16.mxu1 %v5147_v18  ;;  %v5216_v18 = vld [vmem:[%s5642_s22 + $0xe00] ss:$8 sps:$4 sm:$0xff]  }
 0x20c   : > { %3672 = vmatpush1.bf16.msra.mxu0 %v5142_v22  ;;  %v5223_v22 = vld [vmem:[%s5642_s22 + $0xe14] ss:$8 sps:$4 sm:$0xff]  }
 0x20d   : > { %3713 = vmatpush1.bf16.msra.mxu1 %v5145_v58  ;;  %3673 = vmatprep.subr.bf16.mxu0 %v5150_v23  ;;  %v5221_v58 = vld [vmem:[%s5642_s22 + $0xe10] ss:$8 sps:$4 sm:$0xff]   ;;  %v5427_v23 = vmov 0  }
 0x20e   : > { %3714 = vmatprep.subr.bf16.mxu1 %v5153_v62  ;;  %v3369_v31 = vpop.f32.mrb[8].mxu0  ;;  %v5229_v62 = vld [vmem:[%s5642_s22 + $0xe34] ss:$8 sps:$4 sm:$0xff]  }
 0x20f   : > { %v3410_v32 = vpop.f32.mrb[8].mxu1  ;;  %v3370_v33 = vadd.f32 %v3369_v31, %v6075_v20  ;;  %v3371_v34 = vpop.f32.mrb[9].mxu0  ;;  %v5162_v20 = vld [vmem:[%s5642_s22 + $0xc74] ss:$8 sps:$4 sm:$0xff]   ;;  %v5233_v31 = vld [vmem:[%s5642_s22 + $0xe50] ss:$8 sps:$4 sm:$0xff]  }
 0x210   : > { %v3412_v25 = vpop.f32.mrb[9].mxu1  ;;  %v3372_v26 = vadd.f32 %v3371_v34, %v6079_v24  ;;  %v3373_v35 = vpop.f32.mrb[10].mxu0  ;;  %3674 = vmatpush1.bf16.msra.mxu0 %v5148_v27  ;;  %v5227_v27 = vld [vmem:[%s5642_s22 + $0xe30] ss:$8 sps:$4 sm:$0xff]  }
 0x211   : > { %3715 = vmatpush1.bf16.msra.mxu1 %v5151_v28  ;;  %v3414_v38 = vpop.f32.mrb[10].mxu1  ;;  %v6159_v39 = vadd.f32 %v3410_v32, %v3370_v33  ;;  %v3374_v40 = vpop.f32.mrb[11].mxu0  ;;  %3675 = vmatprep.subr.bf16.mxu0 %v5156_v21  ;;  %v5232_v28 = vld [vmem:[%s5642_s22 + $0xe44] ss:$8 sps:$4 sm:$0xff]   ;;  %v5230_v21 = vld [vmem:[%s5642_s22 + $0xe40] ss:$8 sps:$4 sm:$0xff]  }
 0x212   : > { %3716 = vmatprep.subr.bf16.mxu1 %v5159_v29  ;;  %v3415_v24 = vpop.f32.mrb[11].mxu1  ;;  %v6163_v42 = vadd.f32 %v3412_v25, %v3372_v26  ;;  %v5235_v29 = vld [vmem:[%s5642_s22 + $0xe54] ss:$8 sps:$4 sm:$0xff]   ;;  %v5238_v32 = vld [vmem:[%s5642_s22 + $0xe64] ss:$8 sps:$4 sm:$0xff]  }
 0x213   : > { %v5236_v38 = vld [vmem:[%s5642_s22 + $0xe60] ss:$8 sps:$4 sm:$0xff]   ;;  %v5241_v24 = vld [vmem:[%s5642_s22 + $0xe74] ss:$8 sps:$4 sm:$0xff]  }
 0x214   : > { %3676 = vmatpush1.bf16.msra.mxu0 %v5154_v36 }
 0x215   : > { %3717 = vmatpush1.bf16.msra.mxu1 %v5157_v37  ;;  %3677 = vmatprep.subr.bf16.mxu0 %v5162_v20 }
 0x216   : > { %3718 = vmatprep.subr.bf16.mxu1 %v5165_v41 }
 0x218   : > { %3678 = vmatpush1.bf16.msra.mxu0 %v5160_v43 }
 0x219   : > { %3719 = vmatpush1.bf16.msra.mxu1 %v5163_v44  ;;  %3679 = vmatprep.subr.bf16.mxu0 %v5168_v47  ;;  %v5239_v47 = vld [vmem:[%s5642_s22 + $0xe70] ss:$8 sps:$4 sm:$0xff]  }
 0x21a   : > { %3720 = vmatprep.subr.bf16.mxu1 %v5171_v48  ;;  %v5242_v48 = vld [vmem:[%s5635_s30 + $0x70] ss:$0 sps:$4 sm:$0xff]  }
 0x21c   : > { %3680 = vmatpush1.bf16.msra.mxu0 %v5166_v49 }
 0x21d   : > { %3721 = vmatpush1.bf16.msra.mxu1 %v5169_v50  ;;  %3681 = vmatprep.subr.bf16.mxu0 %v5174_v19 }
 0x21e   : > { %3722 = vmatprep.subr.bf16.mxu1 %v5177_v30 }
 0x220   : > { %3682 = vmatpush1.bf16.msra.mxu0 %v5172_v51 }
 0x221   : > { %3723 = vmatpush1.bf16.msra.mxu1 %v5175_v52  ;;  %3683 = vmatprep.subr.bf16.mxu0 %v5180_v53 }
 0x222   : > { %3724 = vmatprep.subr.bf16.mxu1 %v5183_v54 }
 0x224   : > { %3684 = vmatpush1.bf16.msra.mxu0 %v5178_v55 }
 0x225   : > { %3725 = vmatpush1.bf16.msra.mxu1 %v5181_v56  ;;  %3685 = vmatprep.subr.bf16.mxu0 %v5186_v57 }
 0x226   : > { %3726 = vmatprep.subr.bf16.mxu1 %v5189_v59 }
 0x228   : > { %3686 = vmatpush1.bf16.msra.mxu0 %v5184_v60 }
 0x229   : > { %3727 = vmatpush1.bf16.msra.mxu1 %v5187_v61  ;;  %3687 = vmatprep.subr.bf16.mxu0 %v5192_v63 }
 0x22a   : > { %3728 = vmatprep.subr.bf16.mxu1 %v5195_v0 }
 0x22c   : > { %3688 = vmatpush1.bf16.msra.mxu0 %v5190_v3 }
 0x22d   : > { %3729 = vmatpush1.bf16.msra.mxu1 %v5193_v4  ;;  %3689 = vmatprep.subr.bf16.mxu0 %v5198_v5 }
 0x22e   : > { %3730 = vmatprep.subr.bf16.mxu1 %v5201_v6 }
 0x230   : > { %3690 = vmatpush1.bf16.msra.mxu0 %v5196_v45 }
 0x231   : > { %3731 = vmatpush1.bf16.msra.mxu1 %v5199_v46  ;;  %3691 = vmatprep.subr.bf16.mxu0 %v5204_v7 }
 0x232   : > { %3732 = vmatprep.subr.bf16.mxu1 %v5207_v8 }
 0x234   : > { %3692 = vmatpush1.bf16.msra.mxu0 %v5202_v9 }
 0x235   : > { %3733 = vmatpush1.bf16.msra.mxu1 %v5205_v10  ;;  %3693 = vmatprep.subr.bf16.mxu0 %v5210_v11 }
 0x236   : > { %3734 = vmatprep.subr.bf16.mxu1 %v5213_v12 }
 0x238   : > { %3694 = vmatpush1.bf16.msra.mxu0 %v5208_v13 }
 0x239   : > { %3735 = vmatpush1.bf16.msra.mxu1 %v5211_v14  ;;  %3745 = vmatprep.subr.bf16.mxu0 %v5218_v15 }
 0x23b   : > { %3696 = vmatmul.mubr.bf16.vlgmr.msra.gmra.mrb[24].mxu0 %v3954_v16 }
 0x23c   : > { %3737 = vmatmul.mubr.bf16.vlgmr.msra.gmra.mrb[24].mxu1 %v3956_v17  ;;  %3746 = vmatpush1.bf16.msra.mxu0 %v5216_v18 }
 0x23d   : > { %3777 = vmatprep.mubr.bf16.mxu0 %v5427_v23  ;;  %3747 = vmatprep.subr.bf16.mxu0 %v5223_v22  ;;  %v268_v22 = vld [vmem:[#allocation2] sm:$0xff] }
 0x240   : > { %3748 = vmatpush1.bf16.msra.mxu0 %v5221_v58 }
 0x241   : > { %3749 = vmatprep.subr.bf16.mxu0 %v5226_v1  ;;  %v269_v1 = vld [vmem:[#allocation2 + $0x8] sm:$0xff] }
 0x244   : > { %3750 = vmatpush1.bf16.msra.mxu0 %v5224_v2 }
 0x245   : > { %3751 = vmatprep.subr.bf16.mxu0 %v5229_v62 }
 0x248   : > { %3752 = vmatpush1.bf16.msra.mxu0 %v5227_v27 }
 0x249   : > { %3753 = vmatprep.subr.bf16.mxu0 %v5232_v28 }
 0x24c   : > { %3754 = vmatpush1.bf16.msra.mxu0 %v5230_v21 }
 0x24d   : > { %3755 = vmatprep.subr.bf16.mxu0 %v5235_v29 }
 0x24e   : > { %v3451_v33 = vpop.f32.mrb[12].mxu0 }
 0x24f   : > { %v3492_v34 = vpop.f32.mrb[12].mxu1  ;;  %v3452_v25 = vadd.f32 %v3451_v33, %v6159_v39  ;;  %v3453_v26 = vpop.f32.mrb[13].mxu0  ;;  %v3796_v33 = vld [vmem:[#allocation8] sm:$0x3] (!%p4423_p9) }
 0x250   : > { %v3494_v35 = vpop.f32.mrb[13].mxu1  ;;  %v3454_v36 = vadd.f32 %v3453_v26, %v6163_v42  ;;  %v3455_v37 = vpop.f32.mrb[14].mxu0  ;;  %3756 = vmatpush1.bf16.msra.mxu0 %v5233_v31  ;;  %v3798_v31 = vlaneseq (!%p4423_p9) }
 0x251   : > { %v3496_v40 = vpop.f32.mrb[14].mxu1  ;;  %v3493_v20 = vadd.f32 %v3492_v34, %v3452_v25  ;;  %v3456_v41 = vpop.f32.mrb[15].mxu0  ;;  %3757 = vmatprep.subr.bf16.mxu0 %v5238_v32 }
 0x252   : > { %v3497_v43 = vpop.f32.mrb[15].mxu1  ;;  %v3495_v44 = vadd.f32 %v3494_v35, %v3454_v36  ;;  %v3799_v32 = vshrl.u32 (!%p4423_p9), %v3798_v31, 7 }
 0x254   : > { %3758 = vmatpush1.bf16.msra.mxu0 %v5236_v38  ;;  %v3800_v34 = vsub.s32 (!%p4423_p9), 0, %v3799_v32  ;;  %v3804_v25 = vsub.s32 (!%p4423_p9), 1, %v3799_v32 }
 0x255   : > { %3759 = vmatprep.subr.bf16.mxu0 %v5241_v24 }
 0x256   : > { %v3801_v36 = vrot.slane (!%p4423_p9), %v3796_v33, %v3800_v34  ;;  %v3805_v37 = vrot.slane (!%p4423_p9), %v3796_v33, %v3804_v25 }
 0x258   : > { %3760 = vmatpush1.bf16.msra.mxu0 %v5239_v47 }
 0x25b   : > { %3778 = vmatmul.mubr.bf16.vlgmr.msra.gmra.mrb[28].mxu0 %v5242_v48 }
 0x28e   : > { %v3533_v39 = vpop.f32.mrb[16].mxu0 }
 0x28f   : > { %v3574_v49 = vpop.f32.mrb[16].mxu1  ;;  %v3534_v50 = vadd.f32 %v3533_v39, %v3493_v20  ;;  %v3535_v42 = vpop.f32.mrb[17].mxu0 }
 0x290   : > { %v3576_v19 = vpop.f32.mrb[17].mxu1  ;;  %v3536_v30 = vadd.f32 %v3535_v42, %v3495_v44  ;;  %v3537_v51 = vpop.f32.mrb[18].mxu0 }
 0x291   : > { %v3578_v52 = vpop.f32.mrb[18].mxu1  ;;  %v3575_v53 = vadd.f32 %v3574_v49, %v3534_v50  ;;  %v3538_v54 = vpop.f32.mrb[19].mxu0 }
 0x292   : > { %v3579_v55 = vpop.f32.mrb[19].mxu1  ;;  %v3577_v56 = vadd.f32 %v3576_v19, %v3536_v30 }
 0x2ce   : > { %v3615_v57 = vpop.f32.mrb[20].mxu0 }
 0x2cf   : > { %v3656_v59 = vpop.f32.mrb[20].mxu1  ;;  %v3616_v60 = vadd.f32 %v3615_v57, %v3575_v53  ;;  %v3617_v61 = vpop.f32.mrb[21].mxu0 }
 0x2d0   : > { %v3658_v63 = vpop.f32.mrb[21].mxu1  ;;  %v3618_v0 = vadd.f32 %v3617_v61, %v3577_v56  ;;  %v3619_v3 = vpop.f32.mrb[22].mxu0 }
 0x2d1   : > { %v3660_v4 = vpop.f32.mrb[22].mxu1  ;;  %v3657_v5 = vadd.f32 %v3656_v59, %v3616_v60  ;;  %v3620_v6 = vpop.f32.mrb[23].mxu0 }
 0x2d2   : > { %v3661_v45 = vpop.f32.mrb[23].mxu1  ;;  %v3659_v46 = vadd.f32 %v3658_v63, %v3618_v0 }
 0x30e   : > { %v3697_v7 = vpop.f32.mrb[24].mxu0 }
 0x30f   : > { %v3738_v8 = vpop.f32.mrb[24].mxu1  ;;  %v3698_v9 = vadd.f32 %v3697_v7, %v3657_v5  ;;  %v3699_v10 = vpop.f32.mrb[25].mxu0 }
 0x310   : > { %v3740_v11 = vpop.f32.mrb[25].mxu1  ;;  %v3700_v12 = vadd.f32 %v3699_v10, %v3659_v46  ;;  %v3701_v13 = vpop.f32.mrb[26].mxu0 }
 0x311   : > { %v3742_v14 = vpop.f32.mrb[26].mxu1  ;;  %v3739_v15 = vadd.f32 %v3738_v8, %v3698_v9  ;;  %v3702_v16 = vpop.f32.mrb[27].mxu0 }
 0x312   : > { %v3743_v17 = vpop.f32.mrb[27].mxu1  ;;  %v3741_v18 = vadd.f32 %v3740_v11, %v3700_v12 }
 0x32e   : > { %v3779_v58 = vpop.f32.mrb[28].mxu0  ;;  %3793 = sbr.rel (%p4423_p9) target bundleno = 831 (0x33f), region = 52 }
 0x32f   : > { %v3780_v23 = vadd.f32 %v3779_v58, %v3739_v15  ;;  %v3781_v2 = vpop.f32.mrb[29].mxu0 }
 0x330   : > { %v3782_v62 = vadd.f32 %v3781_v2, %v3741_v18  ;;  %v3783_v27 = vpop.f32.mrb[30].mxu0 }
 0x331   : > { %v3786_v28 = vadd.f32 %v3780_v23, %v268_v22  ;;  %v3784_v21 = vpop.f32.mrb[31].mxu0 }
 0x332   : > { %v3787_v29 = vadd.f32 %v3782_v62, %v269_v1 }
 0x333   : > { %3788 = vst [vmem:[#allocation2] sm:$0xff] %v3786_v28 }
 0x334   : > { %3789 = vst [vmem:[#allocation2 + $0x8] sm:$0xff] %v3787_v29 }
 0x33a   : > { %v3794_v26 = vld [vmem:[#allocation2] sm:$0xff] }
 0x33b   : > { %v3795_v35 = vld [vmem:[#allocation2 + $0x8] sm:$0xff]  ;;  %v3808_v38 = vadd.f32 %v3801_v36, %v3794_v26 }
 0x33c   : > { %v3809_v40 = vadd.f32 %v3805_v37, %v3795_v35 }
 0x33d   : > { %3810 = vst [vmem:[#allocation9] sm:$0xff] %v3808_v38 }
 0x33e   : > { %3811 = vst [vmem:[#allocation9 + $0x8] sm:$0xff] %v3809_v40 }
 0x33f PF: > { %p4462_p11 = scmp.eq.s32.totalorder %s5478_s18, 3  ;;  %s5428_s20 = smov [#allocation9]  }
 0x340   : > { %s3822_s15 = sshll.u32 %s5428_s20, 4  ;;  %s3823_s15 = int_to_ptr.vmem [resolvable:$true] %s3822_s15 }
 0x341   : > { %s5331_s21 = scalar_lea.vmem %s3823_s15, 256  ;;  %p5338_p1 = scmp.lt.s32.totalorder %s3823_s15, %s3823_s15 }
 0x342   : > { %p5332_p13 = scmp.ne.s32.totalorder %s3823_s15, %s5331_s21  ;;  %p5339_p0 = scmp.lt.s32.totalorder %s5331_s21, %s5331_s21 }
 0x344   : > { %p5333_p3 = pnand %p5332_p13, %p4462_p11  ;;  %p5340_p8 = por %p5339_p0, %p5338_p1 }
 0x346   : > { %p5334_p4 = pneg %p5333_p3 }
 0x348   : > { %p5341_p2 = pnand %p5340_p8, %p5334_p4 }
 0x34a   : > { %5344 = shalt.err (!%p5341_p2)
}
 0x34b   : > { %s5345_s7 = scalar_lea.hbm %s6267_s3, 256 }
 0x34c   : > { %p5346_p12 = scmp.ne.s32.totalorder %s6267_s3, %s5345_s7  ;;  %p5351_p5 = scmp.lt.u32.totalorder %s5345_s7, %s6267_s3 }
 0x34e   : > { %p5347_p7 = pnand %p5346_p12, %p4462_p11 }
 0x350   : > { %p5348_p10 = pneg %p5347_p7 }
 0x352   : > { %p5353_p6 = pnand %p5351_p5, %p5348_p10 }
 0x354   : > { %5356 = shalt.err (!%p5353_p6)
}
 0x355   : > { %4445 = dma.vmem_to_hbm [thread:$0]  (%p4462_p11), %s3823_s15, 256, %s6267_s3, [#allocation5]  }
 0x356   : > { %5394 = dma.done.wait (%p4462_p11), [#allocation5], 256  }
 0x357   : > { %5396 = vsyncadd (%p4462_p11), [#allocation5], 4294967040 }
 0x358 PF: > { %s20_s17 = sadd.s32 1, %s5419_s17   ;;  %s6284_s12 = smov %s5403_s13 }
 0x359   : > { %p17_p9 = scmp.ge.s32.totalorder %s20_s17, 6   ;;  %s6285_s13 = smov %s5407_s14 }
 0x35a   : > { %s6286_s14 = smov %s5562_s26  ;;  %s6287_s15 = smov %s5415_s16 }
 0x35b   : > { %s6288_s16 = smov %s6290_s25  ;;  %19 = sbr.rel (!%p17_p9) target bundleno = 7 (0x7), region = 96 }
 0x362   :  { %3835 = vsyncpa [#allocation4], 1 }
 0x363   :  { %3837 = vsyncpa [#allocation4 + $0x1], 1 }
 0x364   :  { %3838 = vsyncpa [#allocation7], 1 }
 0x365   :  { %3840 = vsyncpa [#allocation7 + $0x1], 1 }
 0x366   :  { %3841 = vsyncpa [#allocation5], 1 }
 0x367   :  { %3843 = vsyncpa [#allocation5 + $0x1], 1 }

</bundles_post_ra>
